<compile_context>
chip_gen: v7x
topology: tpu7x:2x2x1
jax: 0.10.0
libtpu: 0.0.40
codegen_flags: <defaults>
</compile_context>

<pallas_src>
import functools

import jax
import jax.numpy as jnp
import numpy as np
from jax import lax
from jax.experimental import pallas as pl
from jax.experimental.pallas import tpu as pltpu

# Finite "minus infinity" for the running max: avoids (-inf) - (-inf) NaNs when a
# whole row of the first kv tile is masked with true -inf.
_M_INIT = -1e30


def _mha_cross_kernel(x_ref, k_ref, v_ref, *rest, n_head, kv_len,
                      has_mask, needs_kv_pad, exp_dtype):
    # Grid = (B, num_q_tiles, num_kv_tiles), kv innermost.
    #   x_ref    : (1, tq, D)           resident across the kv axis
    #   k_ref    : (1, H, tk, dh)       pre-transposed in the wrapper (no einshape here)
    #   v_ref    : (1, H, tk, dh)
    #   mask_ref : (tq, tk)             compute dtype, only when a mask is supplied
    #   wq/bq/wo/bo : resident weights (softmax scale pre-folded into Wq/bq)
    #   out_ref  : (1, tq, D)           written once, at the last kv step
    # Scratch (persists across the kv loop of one (b, q-tile)):
    #   q_sc (H,tq,dh) compute dtype | m_sc,l_sc (H,tq,1) f32 | acc_sc (H,tq,dh) f32
    if has_mask:
        (mask_ref, wq_ref, bq_ref, wo_ref, bo_ref,
         out_ref, q_sc, m_sc, l_sc, acc_sc) = rest
    else:
        (wq_ref, bq_ref, wo_ref, bo_ref,
         out_ref, q_sc, m_sc, l_sc, acc_sc) = rest
        mask_ref = None

    kv = pl.program_id(2)
    tq = q_sc.shape[1]
    dh = q_sc.shape[2]
    tk_blk = k_ref.shape[2]

    @pl.when(kv == 0)
    def _init():
        # q = x @ Wq^T + bq : one full-D MXU matmul per q-tile; the (dh**-0.25)**2
        # scale is already folded into Wq/bq on the host.
        q = lax.dot_general(
            x_ref[0], wq_ref[...],
            dimension_numbers=(((1,), (1,)), ((), ())),
            preferred_element_type=jnp.float32,
        ) + bq_ref[...].astype(jnp.float32)                   # (tq, D) f32
        q = q.astype(q_sc.dtype)
        # Single relayout on the cold path (once per q-tile), not per-head slices.
        q_sc[...] = pltpu.einshape("qhd->hqd", q.reshape(tq, n_head, dh))
        m_sc[...] = jnp.full(m_sc.shape, _M_INIT, m_sc.dtype)
        l_sc[...] = jnp.zeros(l_sc.shape, l_sc.dtype)
        acc_sc[...] = jnp.zeros(acc_sc.shape, acc_sc.dtype)

    kh = k_ref[0]                                             # (H, tk, dh)
    vh = v_ref[0]

    # Head-batched MXU matmul; f32 accumulation, storage-dtype inputs.
    s = jnp.einsum("hqd,hkd->hqk", q_sc[...], kh,
                   preferred_element_type=jnp.float32)        # (H, tq, tk) f32
    if has_mask:
        s = s + mask_ref[...].astype(jnp.float32)[None, :, :]
    if needs_kv_pad:
        # Kill the padded kv columns (only the last tile actually has any).
        col = kv * tk_blk + lax.broadcasted_iota(jnp.int32, (1, 1, tk_blk), 2)
        s = jnp.where(col < kv_len, s, -jnp.inf)

    m_prev = m_sc[...]
    m_next = jnp.maximum(m_prev, s.max(axis=-1, keepdims=True))
    alpha = jnp.exp(m_prev - m_next)
    # bf16 exp on v6e/v7x bf16 EUP (when compute dtype is bf16); stats stay f32.
    p = jnp.exp((s - m_next).astype(exp_dtype))
    l_sc[...] = alpha * l_sc[...] + jnp.sum(p, axis=-1, keepdims=True,
                                            dtype=jnp.float32)
    acc_sc[...] = alpha * acc_sc[...] + jnp.einsum(
        "hqk,hkd->hqd", p.astype(vh.dtype), vh,
        preferred_element_type=jnp.float32)
    m_sc[...] = m_next

    @pl.when(kv == pl.num_programs(2) - 1)
    def _finalize():
        # EUP reciprocal (otherwise idle slot) + one Newton step for ~f32 accuracy.
        l = l_sc[...]
        inv_l = pl.reciprocal(l, approx=True)
        inv_l = inv_l * (2.0 - l * inv_l)
        wv_heads = (acc_sc[...] * inv_l).astype(q_sc.dtype)   # (H, tq, dh)
        wv = pltpu.einshape("hqd->qhd", wv_heads).reshape(tq, n_head * dh)
        out = lax.dot_general(
            wv, wo_ref[...],
            dimension_numbers=(((1,), (1,)), ((), ())),
            preferred_element_type=jnp.float32,
        ) + bo_ref[...].astype(jnp.float32)
        out_ref[0] = out.astype(out_ref.dtype)


def _round_up(x, m):
    return (x + m - 1) // m * m


def _pick_tile(dim, want, multiple):
    """Largest t <= want dividing dim that is a multiple of `multiple`
    (the full dim is always a legal block)."""
    want = max(1, min(want, dim))
    for t in range(want, 0, -1):
        if dim % t == 0 and (t % multiple == 0 or t == dim):
            return t
    return dim


def mha_cross(x, k, v, wq, bq, wo, bo, mask=None, *, n_head,
              tq=256, tk=512, compute_dtype=None, kv_buffers=2,
              single_buffer_weights=True):
    """Pallas forward of MultiHeadAttentionCross.

    x: (B, Tq, D) decoder activations; k, v: (B, Tk, D) cross K/V; weights stored
    PyTorch-style as (out_features, in_features); biases (out_features,).
    For production checkpoints pass compute_dtype=jnp.bfloat16 (f32 matmuls are a
    large MXU-throughput cliff on every TPU generation).
    """
    B, Tq, D = x.shape
    Bk, Tk, Dk = k.shape
    assert Bk == B and Dk == D and v.shape == k.shape
    assert D % n_head == 0
    dh = D // n_head
    has_mask = mask is not None

    compute_dtype = jnp.dtype(x.dtype if compute_dtype is None else compute_dtype)
    exp_dtype = jnp.bfloat16 if compute_dtype == jnp.bfloat16 else jnp.float32

    # Fold the (dh ** -0.25) scaling of q AND k into the query projection:
    # (scale^2 * q) . k == (scale * q) . (scale * k).
    scale_sq = float(dh) ** -0.5
    wq_s = (wq.astype(jnp.float32) * scale_sq).astype(compute_dtype)
    bq_s = (bq.astype(jnp.float32) * scale_sq).astype(compute_dtype).reshape(1, D)
    wo_c = wo.astype(compute_dtype)
    bo_c = bo.astype(compute_dtype).reshape(1, D)

    xc = x.astype(compute_dtype)
    # One-time wrapper transpose to (B, H, Tk, dh): removes the per-kv-step relayout
    # from the kernel; cross-attn K/V are reused across all decode steps so the HBM
    # transpose is amortized.
    k4 = k.astype(compute_dtype).reshape(B, Tk, n_head, dh).transpose(0, 2, 1, 3)
    v4 = v.astype(compute_dtype).reshape(B, Tk, n_head, dh).transpose(0, 2, 1, 3)

    # --- q tiling (sublane-aligned) ---
    tq = _pick_tile(Tq, tq, multiple=8)
    # v7x has 2 TensorCores; the parallel (B, Tq-tile) axes feed them, so make sure
    # there are at least 2 parallel steps when possible.
    if B * (Tq // tq) < 2:
        smaller = _pick_tile(Tq, max(8, tq // 2), multiple=8)
        if smaller < tq:
            tq = smaller

    # --- kv tiling (lane-dense) ---
    if Tk >= 128:
        tk = max(128, (min(tk, _round_up(Tk, 128)) // 128) * 128)   # multiple of 128
    else:
        tk = _round_up(Tk, 8)                                       # tiny contexts
    Tk_pad = _round_up(Tk, tk)

    isz = compute_dtype.itemsize
    p_isz = jnp.dtype(exp_dtype).itemsize

    def vmem_bytes(tq_, tk_):
        pipeline = 2 * (2 * tq_ * D * isz)                    # x + out (double-buffered)
        pipeline += max(kv_buffers, 2) * 2 * tk_ * D * isz    # K + V blocks
        if has_mask:
            pipeline += 2 * tq_ * tk_ * isz
        w_bufs = 1 if single_buffer_weights else 2
        weights = w_bufs * (2 * D * D + 2 * D) * isz
        scratch = n_head * tq_ * dh * isz + n_head * tq_ * (dh + 2) * 4
        temps = n_head * tq_ * tk_ * (4 + p_isz)              # S (f32) + P temporaries
        return pipeline + weights + scratch + temps + (8 << 20)   # Mosaic headroom

    # Shrink tiles until the budget fits v7x's 64 MiB physical VMEM (with margin).
    cap = 56 << 20
    while vmem_bytes(tq, tk) > cap and tk > 128:
        tk = max(128, tk // 2)
        Tk_pad = _round_up(Tk, tk)
    while vmem_bytes(tq, tk) > cap:
        smaller = _pick_tile(Tq, max(8, tq // 2), multiple=8)
        if smaller >= tq:
            break
        tq = smaller
    vmem_limit = int(min(max(vmem_bytes(tq, tk), 16 << 20), 64 << 20))

    needs_kv_pad = Tk_pad != Tk
    if needs_kv_pad:
        pad = Tk_pad - Tk
        k4 = jnp.pad(k4, ((0, 0), (0, 0), (0, pad), (0, 0)))
        v4 = jnp.pad(v4, ((0, 0), (0, 0), (0, pad), (0, 0)))

    if has_mask:
        # The PyTorch path adds mask[:Tq, :Tq], which only broadcasts against the
        # (Tq, Tk) scores when Tk == Tq.
        assert Tk == Tq, "a mask requires Tk == Tq (as in the PyTorch module)"
        assert mask.shape[0] >= Tq and mask.shape[1] >= Tq
        mask_arr = mask[:Tq, :Tq].astype(compute_dtype)       # compute dtype: half DMA
        if needs_kv_pad:
            mask_arr = jnp.pad(mask_arr, ((0, 0), (0, Tk_pad - Tk)))

    grid = (B, Tq // tq, Tk_pad // tk)

    kv_block = (1, n_head, tk, dh)
    kv_index = lambda b, qi, ki: (b, 0, ki, 0)
    if kv_buffers != 2:
        kv_spec = pl.BlockSpec(kv_block, kv_index,
                               pipeline_mode=pl.Buffered(kv_buffers))
    else:
        kv_spec = pl.BlockSpec(kv_block, kv_index)

    def const_spec(shape):
        index_map = lambda b, qi, ki: (0,) * len(shape)
        if single_buffer_weights:
            # Resident weights: no point double-buffering a constant block.
            return pl.BlockSpec(shape, index_map, pipeline_mode=pl.Buffered(1))
        return pl.BlockSpec(shape, index_map)

    in_specs = [
        pl.BlockSpec((1, tq, D), lambda b, qi, ki: (b, qi, 0)),   # x
        kv_spec,                                                  # k (B,H,Tk,dh)
        kv_spec,                                                  # v (B,H,Tk,dh)
    ]
    args = [xc, k4, v4]
    if has_mask:
        in_specs.append(pl.BlockSpec((tq, tk), lambda b, qi, ki: (qi, ki)))
        args.append(mask_arr)
    in_specs += [
        const_spec((D, D)),   # Wq (scale pre-folded)
        const_spec((1, D)),   # bq (scale pre-folded)
        const_spec((D, D)),   # Wo
        const_spec((1, D)),   # bo
    ]
    args += [wq_s, bq_s, wo_c, bo_c]

    scratch_shapes = [
        pltpu.VMEM((n_head, tq, dh), compute_dtype),   # q (projected, head-split)
        pltpu.VMEM((n_head, tq, 1), jnp.float32),      # running max
        pltpu.VMEM((n_head, tq, 1), jnp.float32),      # running sum
        pltpu.VMEM((n_head, tq, dh), jnp.float32),     # unnormalized PV accumulator
    ]

    kernel = functools.partial(
        _mha_cross_kernel, n_head=n_head, kv_len=Tk,
        has_mask=has_mask, needs_kv_pad=needs_kv_pad, exp_dtype=exp_dtype)

    return pl.pallas_call(
        kernel,
        out_shape=jax.ShapeDtypeStruct((B, Tq, D), compute_dtype),
        grid_spec=pltpu.PrefetchScalarGridSpec(
            num_scalar_prefetch=0,
            grid=grid,
            in_specs=in_specs,
            out_specs=pl.BlockSpec((1, tq, D), lambda b, qi, ki: (b, qi, 0)),
            scratch_shapes=scratch_shapes,
        ),
        compiler_params=pltpu.CompilerParams(
            dimension_semantics=("parallel", "parallel", "arbitrary"),
            vmem_limit_bytes=vmem_limit,
        ),
    )(*args)


def ref_forward(x, k, v, wq, bq, wo, bo, mask=None, *, n_head):
    """Pure-JAX replica of the PyTorch forward (for verification)."""
    B, Tq, D = x.shape
    Tk = k.shape[1]
    dh = D // n_head
    scale = dh ** -0.25
    q = jnp.einsum("btd,ed->bte", x, wq) + bq
    qh = q.reshape(B, Tq, n_head, dh).transpose(0, 2, 1, 3) * scale
    kh = k.reshape(B, Tk, n_head, dh).transpose(0, 2, 3, 1) * scale
    vh = v.reshape(B, Tk, n_head, dh).transpose(0, 2, 1, 3)
    qk = qh @ kh
    if mask is not None:
        qk = qk + mask[:Tq, :Tq]
    w = jax.nn.softmax(qk.astype(jnp.float32), axis=-1).astype(q.dtype)
    wv = (w @ vh).transpose(0, 2, 1, 3).reshape(B, Tq, D)
    return jnp.einsum("btd,ed->bte", wv, wo) + bo


if __name__ == "__main__":
    # Small, module-consistent shapes: n_state=64, n_head=4, d_head=16.
    B, Tq, Tk, D, H = 2, 16, 300, 64, 4

    key = jax.random.PRNGKey(0)
    kx, kk_, kv_, kwq, kbq, kwo, kbo = jax.random.split(key, 7)

    x = jax.random.normal(kx, (B, Tq, D), jnp.float32)
    k = jax.random.normal(kk_, (B, Tk, D), jnp.float32)
    v = jax.random.normal(kv_, (B, Tk, D), jnp.float32)

    # PyTorch Linear layout: weight (out, in), bias (out,)
    wq = jax.random.normal(kwq, (D, D), jnp.float32) * 0.1
    bq = jax.random.normal(kbq, (D,), jnp.float32) * 0.1
    wo = jax.random.normal(kwo, (D, D), jnp.float32) * 0.1
    bo = jax.random.normal(kbo, (D,), jnp.float32) * 0.1

    # 1) mask=None (the path TextDecoderTensorCache uses for cross-attention).
    #    Tk=300 exercises the kv padding (300 -> 384) + in-kernel iota masking and
    #    all three grid axes: grid = (B=2, Tq/8=2, 384/128=3).
    out = jax.block_until_ready(
        mha_cross(x, k, v, wq, bq, wo, bo, mask=None, n_head=H, tq=8, tk=128))
    ref = ref_forward(x, k, v, wq, bq, wo, bo, mask=None, n_head=H)
    np.testing.assert_allclose(np.asarray(out), np.asarray(ref), rtol=2e-3, atol=2e-3)

    # 2) masked path (PyTorch adds mask[:Tq, :Tq]; requires Tk == Tq). Uses a true
    #    -inf causal mask to exercise the finite running-max initialization.
    k2, v2 = k[:, :Tq, :], v[:, :Tq, :]
    mask_big = jnp.triu(jnp.full((2 * Tq, 2 * Tq), -jnp.inf, jnp.float32), k=1)
    out2 = jax.block_until_ready(
        mha_cross(x, k2, v2, wq, bq, wo, bo, mask=mask_big, n_head=H, tq=8))
    ref2 = ref_forward(x, k2, v2, wq, bq, wo, bo, mask=mask_big, n_head=H)
    np.testing.assert_allclose(np.asarray(out2), np.asarray(ref2), rtol=2e-3, atol=2e-3)

    # 3) bf16 compute path (production dtype; exercises the bf16-exp EUP path).
    xb, kb, vb = (a.astype(jnp.bfloat16) for a in (x, k, v))
    out3 = jax.block_until_ready(
        mha_cross(xb, kb, vb, wq, bq, wo, bo, mask=None, n_head=H))
    ref3 = ref_forward(xb, kb, vb,
                       wq.astype(jnp.bfloat16), bq.astype(jnp.bfloat16),
                       wo.astype(jnp.bfloat16), bo.astype(jnp.bfloat16),
                       mask=None, n_head=H)
    np.testing.assert_allclose(np.asarray(out3, dtype=np.float32),
                               np.asarray(ref3, dtype=np.float32),
                               rtol=6e-2, atol=6e-2)

    print("KERNEL_OK")
</pallas_src>

<mosaic_0001>
module attributes {stable_mosaic.version = 11 : i64} {
  func.func @_mha_cross_kernel(%arg0: i32, %arg1: i32, %arg2: i32, %arg3: memref<1x8x64xf32, #tpu.memory_space<vmem>>, %arg4: memref<1x4x128x16xf32, #tpu.memory_space<vmem>>, %arg5: memref<1x4x128x16xf32, #tpu.memory_space<vmem>>, %arg6: memref<64x64xf32, #tpu.memory_space<vmem>>, %arg7: memref<1x64xf32, #tpu.memory_space<vmem>>, %arg8: memref<64x64xf32, #tpu.memory_space<vmem>>, %arg9: memref<1x64xf32, #tpu.memory_space<vmem>>, %arg10: memref<1x8x64xf32, #tpu.memory_space<vmem>>, %arg11: memref<4x8x16xf32, #tpu.memory_space<vmem>>, %arg12: memref<4x8x1xf32, #tpu.memory_space<vmem>>, %arg13: memref<4x8x1xf32, #tpu.memory_space<vmem>>, %arg14: memref<4x8x16xf32, #tpu.memory_space<vmem>>) attributes {dimension_semantics = [#tpu.dimension_semantics<parallel>, #tpu.dimension_semantics<parallel>, #tpu.dimension_semantics<arbitrary>], iteration_bounds = array<i64: 2, 2, 3>, scalar_prefetch = 0 : i64, scratch_operands = 4 : i64, tpu.core_type = #tpu.core_type<tc>, window_params = [{transform_indices = @transform_0, window_bounds = array<i64: 1, 8, 64>}, {transform_indices = @transform_1, window_bounds = array<i64: 1, 4, 128, 16>}, {transform_indices = @transform_2, window_bounds = array<i64: 1, 4, 128, 16>}, {pipeline_mode = #tpu.pipeline_mode<synchronous>, transform_indices = @transform_3, window_bounds = array<i64: 64, 64>}, {pipeline_mode = #tpu.pipeline_mode<synchronous>, transform_indices = @transform_4, window_bounds = array<i64: 1, 64>}, {pipeline_mode = #tpu.pipeline_mode<synchronous>, transform_indices = @transform_5, window_bounds = array<i64: 64, 64>}, {pipeline_mode = #tpu.pipeline_mode<synchronous>, transform_indices = @transform_6, window_bounds = array<i64: 1, 64>}, {transform_indices = @transform_7, window_bounds = array<i64: 1, 8, 64>}]} {
    %c0_i32 = arith.constant 0 : i32
    %0 = arith.cmpi eq, %arg2, %c0_i32 : i32
    %1 = arith.extui %0 : i1 to i32
    %c0_i32_0 = arith.constant 0 : i32
    %2 = arith.cmpi ne, %1, %c0_i32_0 : i32
    scf.if %2 {
      %c0_34 = arith.constant 0 : index
      %c0_35 = arith.constant 0 : index
      %c0_36 = arith.constant 0 : index
      %44 = vector.load %arg3[%c0_34, %c0_35, %c0_36] : memref<1x8x64xf32, #tpu.memory_space<vmem>>, vector<1x8x64xf32>
      %45 = vector.shape_cast %44 : vector<1x8x64xf32> to vector<8x64xf32>
      %c0_37 = arith.constant 0 : index
      %c0_38 = arith.constant 0 : index
      %46 = vector.load %arg6[%c0_37, %c0_38] : memref<64x64xf32, #tpu.memory_space<vmem>>, vector<64x64xf32>
      %cst_39 = arith.constant dense<0.000000e+00> : vector<8x64xf32>
      %47 = tpu.matmul %45, %46, %cst_39 {dimension_numbers = #tpu.dot_dimension_numbers<[1], [1], [0], [0], [0, 0, 1, 0], [], []>} : vector<8x64xf32>, vector<64x64xf32>, vector<8x64xf32> -> vector<8x64xf32>
      %c0_40 = arith.constant 0 : index
      %c0_41 = arith.constant 0 : index
      %48 = vector.load %arg7[%c0_40, %c0_41] : memref<1x64xf32, #tpu.memory_space<vmem>>, vector<1x64xf32>
      %49 = vector.broadcast %48 : vector<1x64xf32> to vector<8x64xf32>
      %50 = arith.addf %47, %49 : vector<8x64xf32>
      %51 = vector.shape_cast %50 : vector<8x64xf32> to vector<8x4x16xf32>
      %52 = tpu.transpose %51, [1, 0, 2] : vector<8x4x16xf32> -> vector<4x8x16xf32>
      %c0_42 = arith.constant 0 : index
      %c0_43 = arith.constant 0 : index
      %c0_44 = arith.constant 0 : index
      %53 = vector.load %arg11[%c0_42, %c0_43, %c0_44] : memref<4x8x16xf32, #tpu.memory_space<vmem>>, vector<4x8x16xf32>
      tpu.vector_store %arg11[%c0_42, %c0_43, %c0_44], %52 {strides = array<i32>} : memref<4x8x16xf32, #tpu.memory_space<vmem>>, vector<4x8x16xf32>,
      %cst_45 = arith.constant -1.000000e+30 : f32
      %54 = vector.broadcast %cst_45 : f32 to vector<4x8x1xf32>
      %c0_46 = arith.constant 0 : index
      %c0_47 = arith.constant 0 : index
      %c0_48 = arith.constant 0 : index
      %55 = vector.load %arg12[%c0_46, %c0_47, %c0_48] : memref<4x8x1xf32, #tpu.memory_space<vmem>>, vector<4x8x1xf32>
      tpu.vector_store %arg12[%c0_46, %c0_47, %c0_48], %54 {strides = array<i32>} : memref<4x8x1xf32, #tpu.memory_space<vmem>>, vector<4x8x1xf32>,
      %cst_49 = arith.constant 0.000000e+00 : f32
      %56 = vector.broadcast %cst_49 : f32 to vector<4x8x1xf32>
      %c0_50 = arith.constant 0 : index
      %c0_51 = arith.constant 0 : index
      %c0_52 = arith.constant 0 : index
      %57 = vector.load %arg13[%c0_50, %c0_51, %c0_52] : memref<4x8x1xf32, #tpu.memory_space<vmem>>, vector<4x8x1xf32>
      tpu.vector_store %arg13[%c0_50, %c0_51, %c0_52], %56 {strides = array<i32>} : memref<4x8x1xf32, #tpu.memory_space<vmem>>, vector<4x8x1xf32>,
      %cst_53 = arith.constant 0.000000e+00 : f32
      %58 = vector.broadcast %cst_53 : f32 to vector<4x8x16xf32>
      %c0_54 = arith.constant 0 : index
      %c0_55 = arith.constant 0 : index
      %c0_56 = arith.constant 0 : index
      %59 = vector.load %arg14[%c0_54, %c0_55, %c0_56] : memref<4x8x16xf32, #tpu.memory_space<vmem>>, vector<4x8x16xf32>
      tpu.vector_store %arg14[%c0_54, %c0_55, %c0_56], %58 {strides = array<i32>} : memref<4x8x16xf32, #tpu.memory_space<vmem>>, vector<4x8x16xf32>,
    } else {
    }
    %c0 = arith.constant 0 : index
    %c0_1 = arith.constant 0 : index
    %c0_2 = arith.constant 0 : index
    %c0_3 = arith.constant 0 : index
    %3 = vector.load %arg4[%c0, %c0_1, %c0_2, %c0_3] : memref<1x4x128x16xf32, #tpu.memory_space<vmem>>, vector<1x4x128x16xf32>
    %4 = vector.shape_cast %3 : vector<1x4x128x16xf32> to vector<4x128x16xf32>
    %c0_4 = arith.constant 0 : index
    %c0_5 = arith.constant 0 : index
    %c0_6 = arith.constant 0 : index
    %c0_7 = arith.constant 0 : index
    %5 = vector.load %arg5[%c0_4, %c0_5, %c0_6, %c0_7] : memref<1x4x128x16xf32, #tpu.memory_space<vmem>>, vector<1x4x128x16xf32>
    %6 = vector.shape_cast %5 : vector<1x4x128x16xf32> to vector<4x128x16xf32>
    %c0_8 = arith.constant 0 : index
    %c0_9 = arith.constant 0 : index
    %c0_10 = arith.constant 0 : index
    %7 = vector.load %arg11[%c0_8, %c0_9, %c0_10] : memref<4x8x16xf32, #tpu.memory_space<vmem>>, vector<4x8x16xf32>
    "tpu.trace_start"() <{level = 10 : i32, message = "hqd,hkd->hqk"}> : () -> ()
    %cst = arith.constant dense<0.000000e+00> : vector<4x8x128xf32>
    %8 = tpu.matmul %7, %4, %cst {dimension_numbers = #tpu.dot_dimension_numbers<[2], [2], [1], [1], [0, 0, 0, 1, 1, 1], [0], [0]>} : vector<4x8x16xf32>, vector<4x128x16xf32>, vector<4x8x128xf32> -> vector<4x8x128xf32>
    "tpu.trace_stop"() : () -> ()
    %c128_i32 = arith.constant 128 : i32
    %9 = arith.muli %arg2, %c128_i32 : i32
    %10 = tpu.iota {dimensions = array<i32: 2>} : vector<1x1x128xi32>
    %11 = vector.broadcast %9 : i32 to vector<1x1x128xi32>
    %12 = arith.addi %11, %10 : vector<1x1x128xi32>
    %c300_i32 = arith.constant 300 : i32
    %13 = vector.broadcast %c300_i32 : i32 to vector<1x1x128xi32>
    %14 = arith.cmpi slt, %12, %13 : vector<1x1x128xi32>
    %cst_11 = arith.constant 0xFF800000 : f32
    %15 = vector.shape_cast %14 : vector<1x1x128xi1> to vector<1x1x128xi1>
    %16 = vector.broadcast %15 : vector<1x1x128xi1> to vector<4x8x128xi1>
    %17 = vector.broadcast %cst_11 : f32 to vector<4x8x128xf32>
    %18 = arith.select %16, %8, %17 : vector<4x8x128xi1>, vector<4x8x128xf32>
    %c0_12 = arith.constant 0 : index
    %c0_13 = arith.constant 0 : index
    %c0_14 = arith.constant 0 : index
    %19 = vector.load %arg12[%c0_12, %c0_13, %c0_14] : memref<4x8x1xf32, #tpu.memory_space<vmem>>, vector<4x8x1xf32>
    %cst_15 = arith.constant dense<0xFF800000> : vector<4x8xf32>
    %20 = vector.multi_reduction <maximumf>, %18, %cst_15 [2] : vector<4x8x128xf32> to vector<4x8xf32>
    %21 = vector.shape_cast %20 : vector<4x8xf32> to vector<4x8x1xf32>
    %22 = arith.maximumf %19, %21 : vector<4x8x1xf32>
    %23 = arith.subf %19, %22 : vector<4x8x1xf32>
    %24 = math.exp %23 : vector<4x8x1xf32>
    %25 = vector.broadcast %22 : vector<4x8x1xf32> to vector<4x8x128xf32>
    %26 = arith.subf %18, %25 : vector<4x8x128xf32>
    %27 = math.exp %26 : vector<4x8x128xf32>
    %c0_16 = arith.constant 0 : index
    %c0_17 = arith.constant 0 : index
    %c0_18 = arith.constant 0 : index
    %28 = vector.load %arg13[%c0_16, %c0_17, %c0_18] : memref<4x8x1xf32, #tpu.memory_space<vmem>>, vector<4x8x1xf32>
    %29 = arith.mulf %24, %28 : vector<4x8x1xf32>
    %cst_19 = arith.constant dense<0.000000e+00> : vector<4x8xf32>
    %30 = vector.multi_reduction <add>, %27, %cst_19 [2] : vector<4x8x128xf32> to vector<4x8xf32>
    %31 = vector.shape_cast %30 : vector<4x8xf32> to vector<4x8x1xf32>
    %32 = arith.addf %29, %31 : vector<4x8x1xf32>
    %c0_20 = arith.constant 0 : index
    %c0_21 = arith.constant 0 : index
    %c0_22 = arith.constant 0 : index
    %33 = vector.load %arg13[%c0_20, %c0_21, %c0_22] : memref<4x8x1xf32, #tpu.memory_space<vmem>>, vector<4x8x1xf32>
    tpu.vector_store %arg13[%c0_20, %c0_21, %c0_22], %32 {strides = array<i32>} : memref<4x8x1xf32, #tpu.memory_space<vmem>>, vector<4x8x1xf32>,
    %c0_23 = arith.constant 0 : index
    %c0_24 = arith.constant 0 : index
    %c0_25 = arith.constant 0 : index
    %34 = vector.load %arg14[%c0_23, %c0_24, %c0_25] : memref<4x8x16xf32, #tpu.memory_space<vmem>>, vector<4x8x16xf32>
    %35 = vector.broadcast %24 : vector<4x8x1xf32> to vector<4x8x16xf32>
    %36 = arith.mulf %35, %34 : vector<4x8x16xf32>
    "tpu.trace_start"() <{level = 10 : i32, message = "hqk,hkd->hqd"}> : () -> ()
    %cst_26 = arith.constant dense<0.000000e+00> : vector<4x8x16xf32>
    %37 = tpu.matmul %27, %6, %cst_26 {dimension_numbers = #tpu.dot_dimension_numbers<[2], [1], [1], [2], [0, 0, 0, 1, 1, 2], [0], [0]>} : vector<4x8x128xf32>, vector<4x128x16xf32>, vector<4x8x16xf32> -> vector<4x8x16xf32>
    "tpu.trace_stop"() : () -> ()
    %38 = arith.addf %36, %37 : vector<4x8x16xf32>
    %c0_27 = arith.constant 0 : index
    %c0_28 = arith.constant 0 : index
    %c0_29 = arith.constant 0 : index
    %39 = vector.load %arg14[%c0_27, %c0_28, %c0_29] : memref<4x8x16xf32, #tpu.memory_space<vmem>>, vector<4x8x16xf32>
    tpu.vector_store %arg14[%c0_27, %c0_28, %c0_29], %38 {strides = array<i32>} : memref<4x8x16xf32, #tpu.memory_space<vmem>>, vector<4x8x16xf32>,
    %c0_30 = arith.constant 0 : index
    %c0_31 = arith.constant 0 : index
    %c0_32 = arith.constant 0 : index
    %40 = vector.load %arg12[%c0_30, %c0_31, %c0_32] : memref<4x8x1xf32, #tpu.memory_space<vmem>>, vector<4x8x1xf32>
    tpu.vector_store %arg12[%c0_30, %c0_31, %c0_32], %22 {strides = array<i32>} : memref<4x8x1xf32, #tpu.memory_space<vmem>>, vector<4x8x1xf32>,
    %c2_i32 = arith.constant 2 : i32
    %41 = arith.cmpi eq, %arg2, %c2_i32 : i32
    %42 = arith.extui %41 : i1 to i32
    %c0_i32_33 = arith.constant 0 : i32
    %43 = arith.cmpi ne, %42, %c0_i32_33 : i32
    scf.if %43 {
      %c0_34 = arith.constant 0 : index
      %c0_35 = arith.constant 0 : index
      %c0_36 = arith.constant 0 : index
      %44 = vector.load %arg13[%c0_34, %c0_35, %c0_36] : memref<4x8x1xf32, #tpu.memory_space<vmem>>, vector<4x8x1xf32>
      %45 = tpu.reciprocal %44 {approx = true} : vector<4x8x1xf32> -> vector<4x8x1xf32>
      %46 = arith.mulf %44, %45 : vector<4x8x1xf32>
      %cst_37 = arith.constant 2.000000e+00 : f32
      %47 = vector.broadcast %cst_37 : f32 to vector<4x8x1xf32>
      %48 = arith.subf %47, %46 : vector<4x8x1xf32>
      %49 = arith.mulf %45, %48 : vector<4x8x1xf32>
      %c0_38 = arith.constant 0 : index
      %c0_39 = arith.constant 0 : index
      %c0_40 = arith.constant 0 : index
      %50 = vector.load %arg14[%c0_38, %c0_39, %c0_40] : memref<4x8x16xf32, #tpu.memory_space<vmem>>, vector<4x8x16xf32>
      %51 = vector.broadcast %49 : vector<4x8x1xf32> to vector<4x8x16xf32>
      %52 = arith.mulf %50, %51 : vector<4x8x16xf32>
      %53 = tpu.transpose %52, [1, 0, 2] : vector<4x8x16xf32> -> vector<8x4x16xf32>
      %54 = vector.shape_cast %53 : vector<8x4x16xf32> to vector<8x64xf32>
      %c0_41 = arith.constant 0 : index
      %c0_42 = arith.constant 0 : index
      %55 = vector.load %arg8[%c0_41, %c0_42] : memref<64x64xf32, #tpu.memory_space<vmem>>, vector<64x64xf32>
      %cst_43 = arith.constant dense<0.000000e+00> : vector<8x64xf32>
      %56 = tpu.matmul %54, %55, %cst_43 {dimension_numbers = #tpu.dot_dimension_numbers<[1], [1], [0], [0], [0, 0, 1, 0], [], []>} : vector<8x64xf32>, vector<64x64xf32>, vector<8x64xf32> -> vector<8x64xf32>
      %c0_44 = arith.constant 0 : index
      %c0_45 = arith.constant 0 : index
      %57 = vector.load %arg9[%c0_44, %c0_45] : memref<1x64xf32, #tpu.memory_space<vmem>>, vector<1x64xf32>
      %58 = vector.broadcast %57 : vector<1x64xf32> to vector<8x64xf32>
      %59 = arith.addf %56, %58 : vector<8x64xf32>
      %c0_46 = arith.constant 0 : index
      %c0_47 = arith.constant 0 : index
      %c0_48 = arith.constant 0 : index
      %60 = vector.load %arg10[%c0_46, %c0_47, %c0_48] : memref<1x8x64xf32, #tpu.memory_space<vmem>>, vector<1x8x64xf32>
      %61 = vector.shape_cast %60 : vector<1x8x64xf32> to vector<8x64xf32>
      %62 = vector.shape_cast %59 : vector<8x64xf32> to vector<1x8x64xf32>
      tpu.vector_store %arg10[%c0_46, %c0_47, %c0_48], %62 {strides = array<i32>} : memref<1x8x64xf32, #tpu.memory_space<vmem>>, vector<1x8x64xf32>,
    } else {
    }
    return
  }
  func.func @transform_0(%arg0: i32, %arg1: i32, %arg2: i32) -> (i32, i32, i32) {
    %c0_i32 = arith.constant 0 : i32
    %c0_i32_0 = arith.constant 0 : i32
    return %arg0, %arg1, %c0_i32 : i32, i32, i32
  }
  func.func @transform_1(%arg0: i32, %arg1: i32, %arg2: i32) -> (i32, i32, i32, i32) {
    %c0_i32 = arith.constant 0 : i32
    %c0_i32_0 = arith.constant 0 : i32
    %c0_i32_1 = arith.constant 0 : i32
    return %arg0, %c0_i32, %arg2, %c0_i32_0 : i32, i32, i32, i32
  }
  func.func @transform_2(%arg0: i32, %arg1: i32, %arg2: i32) -> (i32, i32, i32, i32) {
    %c0_i32 = arith.constant 0 : i32
    %c0_i32_0 = arith.constant 0 : i32
    %c0_i32_1 = arith.constant 0 : i32
    return %arg0, %c0_i32, %arg2, %c0_i32_0 : i32, i32, i32, i32
  }
  func.func @transform_3(%arg0: i32, %arg1: i32, %arg2: i32) -> (i32, i32) {
    %c0_i32 = arith.constant 0 : i32
    %c0_i32_0 = arith.constant 0 : i32
    %c0_i32_1 = arith.constant 0 : i32
    return %c0_i32, %c0_i32_0 : i32, i32
  }
  func.func @transform_4(%arg0: i32, %arg1: i32, %arg2: i32) -> (i32, i32) {
    %c0_i32 = arith.constant 0 : i32
    %c0_i32_0 = arith.constant 0 : i32
    %c0_i32_1 = arith.constant 0 : i32
    return %c0_i32, %c0_i32_0 : i32, i32
  }
  func.func @transform_5(%arg0: i32, %arg1: i32, %arg2: i32) -> (i32, i32) {
    %c0_i32 = arith.constant 0 : i32
    %c0_i32_0 = arith.constant 0 : i32
    %c0_i32_1 = arith.constant 0 : i32
    return %c0_i32, %c0_i32_0 : i32, i32
  }
  func.func @transform_6(%arg0: i32, %arg1: i32, %arg2: i32) -> (i32, i32) {
    %c0_i32 = arith.constant 0 : i32
    %c0_i32_0 = arith.constant 0 : i32
    %c0_i32_1 = arith.constant 0 : i32
    return %c0_i32, %c0_i32_0 : i32, i32
  }
  func.func @transform_7(%arg0: i32, %arg1: i32, %arg2: i32) -> (i32, i32, i32) {
    %c0_i32 = arith.constant 0 : i32
    %c0_i32_0 = arith.constant 0 : i32
    return %arg0, %arg1, %c0_i32 : i32, i32, i32
  }
}

</mosaic_0001>

<bundles_post_ra>
// kernel: tpu_custom_call.1
= control target key start
LH: loop header
LB: loop body
LE: loop exit
PB: predicated region body
PF: predicated region fallthrough
CT: control target
= control target key end

     0   :  { %s4824_s0 = inlined_call_operand.vmem [shape: f32[2,16,64], index: 0, kind: input, shape index: {}]   ;;  %s4825_s1 = inlined_call_operand.vmem [shape: f32[2,4,384,16], index: 1, kind: input, shape index: {}]   ;;  %s4826_s2 = inlined_call_operand.vmem [shape: f32[2,4,384,16], index: 2, kind: input, shape index: {}]   ;;  %s4827_s3 = inlined_call_operand.vmem [shape: f32[64,64], index: 3, kind: input, shape index: {}]   ;;  %s4828_s4 = inlined_call_operand.vmem [shape: f32[1,64], index: 4, kind: input, shape index: {}]   ;;  %s4829_s5 = inlined_call_operand.vmem [shape: f32[64,64], index: 5, kind: input, shape index: {}]   ;;  %s4830_s6 = inlined_call_operand.vmem [shape: f32[1,64], index: 6, kind: input, shape index: {}]   ;;  %s4831_s7 = inlined_call_operand.hbm [shape: f32[2,16,64], index: 7, kind: output, shape index: {}]  }
   0x1   :  { %4841 = sst [smem:[#allocation18_spill]] %s4825_s1 }
   0x2   :  { %4842 = sst [smem:[#allocation19_spill]] %s4826_s2 }
   0x3   :  { %4843 = sst [smem:[#allocation20_spill]] %s4831_s7 }
   0x4   :  { %12 = vsyncpa [#allocation9], 0 }
   0x5   :  { %14 = vsyncpa [#allocation9 + $0x1], 0  ;;  %s3900_s24 = smov 0   ;;  %s3902_s25 = smov 0  }
   0x6   :  { %s3904_s26 = smov 0   ;;  %s3906_s27 = smov 0  }
   0x7   :  { %s3908_s28 = smov 0   ;;  %s3910_s29 = smov 0  }
   0x8   :  { %s3912_s30 = smov 0   ;;  %s3914_s8 = smov 0  }
   0x9   :  { %s3916_s9 = smov 0   ;;  %s3918_s10 = smov 0  }
   0xa   :  { %s3920_s11 = smov 0   ;;  %s3922_s12 = smov 0  }
   0xb LB: > { %4844 = sst [smem:[#allocation11_spill]] %s3791_s24  ;;  %s2710_s13 = sadd.s32 4294967295, %s3835_s12   ;;  %s3835_s12 = sphi %s3922_s12, %s20_s12   ;;  %s3831_s11 = sphi %s3920_s11, %s4871_s11   ;;  %s3827_s10 = sphi %s3918_s10, %s4870_s10   ;;  %s3823_s9 = sphi %s3916_s9, %s4878_s9   ;;  %s3819_s8 = sphi %s3914_s8, %s4868_s8   ;;  %s3815_s30 = sphi %s3912_s30, %s4867_s30   ;;  %s3811_s29 = sphi %s3910_s29, %s4877_s29   ;;  %s3807_s28 = sphi %s3908_s28, %s4876_s28   ;;  %s3803_s27 = sphi %s3906_s27, %s4875_s27   ;;  %s3799_s26 = sphi %s3904_s26, %s4874_s26   ;;  %s3795_s25 = sphi %s3902_s25, %s4873_s25   ;;  %s3791_s24 = sphi %s3900_s24, %s4872_s24  }
   0xc   : > { %4845 = sst [smem:[#allocation12_spill]] %s3827_s10  ;;  %s32_s14 = sadd.s32 1, %s3823_s9 }
   0xd   : > { %4846 = sst [smem:[#allocation13_spill]] %s3831_s11  ;;  %p33_p0 = scmp.ge.s32.totalorder %s32_s14, 3 }
   0xe   : > { %s35_s15 = sadd.s32 1, %s3827_s10  ;;  %s2711_s16 = sadd.s32 4294967294, %s3835_s12  }
   0xf   : > { %p83_p1 = scmp.ne.s32.totalorder %s3807_s28, %s3803_s27  ;;  %s4880_s14 = smov (%p33_p0, %s32_s14), 0 }
  0x10   : > { %4847 = sst [smem:[#allocation14_spill]] %s4880_s14  ;;  %s4882_s15 = smov (!%p33_p0, %s35_s15), %s3827_s10 }
  0x11   : > { %s39_s17 = sadd.s32 1, %s3831_s11  ;;  %p84_p2 = scmp.eq.s32.totalorder %s3835_s12, 0 }
  0x12   : > { %p37_p3 = scmp.ge.s32.totalorder %s4882_s15, 2  ;;  %s72_s18 = ssub.s32 %s3823_s9, %s4880_s14 }
  0x13   : > { %p3973_p4 = por %p84_p2, %p83_p1  ;;  %p226_p5 = scmp.ne.s32.totalorder %s3799_s26, %s3795_s25 }
  0x14   : > { %s4884_s15 = smov (%p37_p3, %s4882_s15), 0  ;;  %s4886_s17 = smov (!%p37_p3, %s39_s17), %s3831_s11 }
  0x15   : > { %4849 = sst [smem:[#allocation15_spill]] %s4884_s15  ;;  %s212_s20 = ssub.s32 %s3827_s10, %s4884_s15 }
  0x16   : > { %p227_p6 = scmp.eq.s32.totalorder %s2710_s13, 11  ;;  %p41_p7 = scmp.ge.s32.totalorder %s4886_s17, 2 }
  0x17   : > { %p232_p8 = scmp.ne.s32.totalorder %s3795_s25, %s3791_s24  ;;  %p233_p10 = scmp.eq.s32.totalorder %s2711_s16, 11 }
  0x18   : > { %p3986_p9 = por %p227_p6, %p226_p5  ;;  %s4888_s17 = smov (%p41_p7, %s4886_s17), 0 }
  0x19   : > { %4851 = sst [smem:[#allocation16_spill]] %s4888_s17  ;;  %s76_s22 = sadd.s32 1, %s3807_s28 }
  0x1a   : > { %p3993_p11 = por %p233_p10, %p232_p8  ;;  %s71_s14 = ssub.s32 %s3831_s11, %s4888_s17 }
  0x1b   : > { %s216_s7 = sadd.s32 1, %s3799_s26  ;;  %s73_s15 = sor.u32 %s72_s18, %s71_s14 }
  0x1c   : > { %s4852_s23 = scalar_select %p3993_p11, 1, 0 }
  0x1d   : > { %s213_s10 = sor.u32 %s212_s20, %s71_s14  ;;  %p74_p12 = scmp.eq.s32.totalorder %s73_s15, 0 }
  0x1e   : > { %4853 = sst [smem:[#allocation17_spill]] %s4852_s23  ;;  %p214_p13 = scmp.eq.s32.totalorder %s213_s10, 0 }
  0x1f   : > { %s4001_s13 = scalar_select %p74_p12, %s3807_s28, %s76_s22  }
  0x20   : > { %s4004_s24 = scalar_select %p214_p13, %s3799_s26, %s216_s7  }
  0x21   : > { %p2713_p0 = scmp.ge.s32.totalorder %s3835_s12, 12 }
  0x23   : > { %261 = sbr.rel (%p2713_p0) target bundleno = 126 (0x7e), region = 32 }
  0x2a   : > { %275 = sbr.rel (!%p3973_p4) target bundleno = 84 (0x54), region = 40  ;;  %s277_s16 = sand.u32 (%p3973_p4), 1, %s3807_s28  }
  0x2b   : > { %s2715_s17 = sshll.u32 (%p3973_p4), %s3823_s9, 4  ;;  %s2714_s23 = sshll.u32 (%p3973_p4), %s277_s16, 9 }
  0x2c   : > { %s3554_s18 = smul.u32 (%p3973_p4), 192, %s3831_s11  ;;  %s4854_s1 = sld [smem:[#allocation18_spill]] (%p3973_p4) }
  0x2d   : > { %s4020_s22 = scalar_lea.vmem (%p3973_p4), [#allocation6], %s2714_s23 }
  0x2e   : > { %s282_s14 = sadd.s32 (%p3973_p4), %s3554_s18, %s2715_s17 }
  0x2f   : > { %s2716_s15 = sshll.u32 (%p3973_p4), %s282_s14, 3 }
  0x32   : > { %s4015_s7 = scalar_lea.vmem %s4854_s1, %s2716_s15 }
  0x33   : > { %v438_v0 = vld [vmem:[%s4015_s7] sm:$0xff]  ;;  %v440_v1 = vld [vmem:[%s4015_s7 + $0x8] sm:$0xff]  ;;  %v442_v2 = vld [vmem:[%s4015_s7 + $0x10] sm:$0xff] }
  0x34   : > { %439 = vst [vmem:[%s4020_s22] sm:$0xff] %v438_v0  ;;  %441 = vst [vmem:[%s4020_s22 + $0x8] sm:$0xff] %v440_v1  ;;  %v444_v3 = vld [vmem:[%s4015_s7 + $0x18] sm:$0xff]  ;;  %v446_v4 = vld [vmem:[%s4015_s7 + $0x20] sm:$0xff] }
  0x35   : > { %443 = vst [vmem:[%s4020_s22 + $0x10] sm:$0xff] %v442_v2  ;;  %v448_v5 = vld [vmem:[%s4015_s7 + $0x28] sm:$0xff]  ;;  %445 = vst [vmem:[%s4020_s22 + $0x18] sm:$0xff] %v444_v3  ;;  %v450_v6 = vld [vmem:[%s4015_s7 + $0x30] sm:$0xff] }
  0x36   : > { %447 = vst [vmem:[%s4020_s22 + $0x20] sm:$0xff] %v446_v4  ;;  %449 = vst [vmem:[%s4020_s22 + $0x28] sm:$0xff] %v448_v5  ;;  %v452_v7 = vld [vmem:[%s4015_s7 + $0x38] sm:$0xff]  ;;  %v454_v8 = vld [vmem:[%s4015_s7 + $0x40] sm:$0xff] }
  0x37   : > { %451 = vst [vmem:[%s4020_s22 + $0x30] sm:$0xff] %v450_v6  ;;  %453 = vst [vmem:[%s4020_s22 + $0x38] sm:$0xff] %v452_v7  ;;  %v456_v9 = vld [vmem:[%s4015_s7 + $0x48] sm:$0xff]  ;;  %v458_v10 = vld [vmem:[%s4015_s7 + $0x50] sm:$0xff] }
  0x38   : > { %455 = vst [vmem:[%s4020_s22 + $0x40] sm:$0xff] %v454_v8  ;;  %v460_v11 = vld [vmem:[%s4015_s7 + $0x58] sm:$0xff]  ;;  %457 = vst [vmem:[%s4020_s22 + $0x48] sm:$0xff] %v456_v9  ;;  %v462_v12 = vld [vmem:[%s4015_s7 + $0x60] sm:$0xff] }
  0x39   : > { %459 = vst [vmem:[%s4020_s22 + $0x50] sm:$0xff] %v458_v10  ;;  %461 = vst [vmem:[%s4020_s22 + $0x58] sm:$0xff] %v460_v11  ;;  %v464_v13 = vld [vmem:[%s4015_s7 + $0x68] sm:$0xff]  ;;  %v466_v14 = vld [vmem:[%s4015_s7 + $0x70] sm:$0xff] }
  0x3a   : > { %463 = vst [vmem:[%s4020_s22 + $0x60] sm:$0xff] %v462_v12  ;;  %465 = vst [vmem:[%s4020_s22 + $0x68] sm:$0xff] %v464_v13  ;;  %v468_v15 = vld [vmem:[%s4015_s7 + $0x78] sm:$0xff]  ;;  %v470_v16 = vld [vmem:[%s4015_s7 + $0x180] sm:$0xff] }
  0x3b   : > { %467 = vst [vmem:[%s4020_s22 + $0x70] sm:$0xff] %v466_v14  ;;  %v472_v17 = vld [vmem:[%s4015_s7 + $0x188] sm:$0xff]  ;;  %469 = vst [vmem:[%s4020_s22 + $0x78] sm:$0xff] %v468_v15  ;;  %v474_v18 = vld [vmem:[%s4015_s7 + $0x190] sm:$0xff] }
  0x3c   : > { %471 = vst [vmem:[%s4020_s22 + $0x80] sm:$0xff] %v470_v16  ;;  %473 = vst [vmem:[%s4020_s22 + $0x88] sm:$0xff] %v472_v17  ;;  %v476_v19 = vld [vmem:[%s4015_s7 + $0x198] sm:$0xff]  ;;  %v478_v20 = vld [vmem:[%s4015_s7 + $0x1a0] sm:$0xff] }
  0x3d   : > { %475 = vst [vmem:[%s4020_s22 + $0x90] sm:$0xff] %v474_v18  ;;  %477 = vst [vmem:[%s4020_s22 + $0x98] sm:$0xff] %v476_v19  ;;  %v480_v21 = vld [vmem:[%s4015_s7 + $0x1a8] sm:$0xff]  ;;  %v482_v22 = vld [vmem:[%s4015_s7 + $0x1b0] sm:$0xff] }
  0x3e   : > { %479 = vst [vmem:[%s4020_s22 + $0xa0] sm:$0xff] %v478_v20  ;;  %v484_v23 = vld [vmem:[%s4015_s7 + $0x1b8] sm:$0xff]  ;;  %481 = vst [vmem:[%s4020_s22 + $0xa8] sm:$0xff] %v480_v21  ;;  %v486_v24 = vld [vmem:[%s4015_s7 + $0x1c0] sm:$0xff] }
  0x3f   : > { %483 = vst [vmem:[%s4020_s22 + $0xb0] sm:$0xff] %v482_v22  ;;  %485 = vst [vmem:[%s4020_s22 + $0xb8] sm:$0xff] %v484_v23  ;;  %v488_v25 = vld [vmem:[%s4015_s7 + $0x1c8] sm:$0xff]  ;;  %v490_v26 = vld [vmem:[%s4015_s7 + $0x1d0] sm:$0xff] }
  0x40   : > { %487 = vst [vmem:[%s4020_s22 + $0xc0] sm:$0xff] %v486_v24  ;;  %489 = vst [vmem:[%s4020_s22 + $0xc8] sm:$0xff] %v488_v25  ;;  %v492_v27 = vld [vmem:[%s4015_s7 + $0x1d8] sm:$0xff]  ;;  %v494_v28 = vld [vmem:[%s4015_s7 + $0x1e0] sm:$0xff] }
  0x41   : > { %491 = vst [vmem:[%s4020_s22 + $0xd0] sm:$0xff] %v490_v26  ;;  %v496_v29 = vld [vmem:[%s4015_s7 + $0x1e8] sm:$0xff]  ;;  %493 = vst [vmem:[%s4020_s22 + $0xd8] sm:$0xff] %v492_v27  ;;  %v498_v30 = vld [vmem:[%s4015_s7 + $0x1f0] sm:$0xff] }
  0x42   : > { %495 = vst [vmem:[%s4020_s22 + $0xe0] sm:$0xff] %v494_v28  ;;  %497 = vst [vmem:[%s4020_s22 + $0xe8] sm:$0xff] %v496_v29  ;;  %v500_v31 = vld [vmem:[%s4015_s7 + $0x1f8] sm:$0xff]  ;;  %v502_v32 = vld [vmem:[%s4015_s7 + $0x300] sm:$0xff] }
  0x43   : > { %499 = vst [vmem:[%s4020_s22 + $0xf0] sm:$0xff] %v498_v30  ;;  %501 = vst [vmem:[%s4020_s22 + $0xf8] sm:$0xff] %v500_v31  ;;  %v504_v33 = vld [vmem:[%s4015_s7 + $0x308] sm:$0xff]  ;;  %v506_v34 = vld [vmem:[%s4015_s7 + $0x310] sm:$0xff] }
  0x44   : > { %503 = vst [vmem:[%s4020_s22 + $0x100] sm:$0xff] %v502_v32  ;;  %v508_v35 = vld [vmem:[%s4015_s7 + $0x318] sm:$0xff]  ;;  %505 = vst [vmem:[%s4020_s22 + $0x108] sm:$0xff] %v504_v33  ;;  %v510_v36 = vld [vmem:[%s4015_s7 + $0x320] sm:$0xff] }
  0x45   : > { %507 = vst [vmem:[%s4020_s22 + $0x110] sm:$0xff] %v506_v34  ;;  %509 = vst [vmem:[%s4020_s22 + $0x118] sm:$0xff] %v508_v35  ;;  %v512_v37 = vld [vmem:[%s4015_s7 + $0x328] sm:$0xff]  ;;  %v514_v38 = vld [vmem:[%s4015_s7 + $0x330] sm:$0xff] }
  0x46   : > { %511 = vst [vmem:[%s4020_s22 + $0x120] sm:$0xff] %v510_v36  ;;  %513 = vst [vmem:[%s4020_s22 + $0x128] sm:$0xff] %v512_v37  ;;  %v516_v39 = vld [vmem:[%s4015_s7 + $0x338] sm:$0xff]  ;;  %v518_v40 = vld [vmem:[%s4015_s7 + $0x340] sm:$0xff] }
  0x47   : > { %515 = vst [vmem:[%s4020_s22 + $0x130] sm:$0xff] %v514_v38  ;;  %v520_v41 = vld [vmem:[%s4015_s7 + $0x348] sm:$0xff]  ;;  %517 = vst [vmem:[%s4020_s22 + $0x138] sm:$0xff] %v516_v39  ;;  %v522_v42 = vld [vmem:[%s4015_s7 + $0x350] sm:$0xff] }
  0x48   : > { %519 = vst [vmem:[%s4020_s22 + $0x140] sm:$0xff] %v518_v40  ;;  %521 = vst [vmem:[%s4020_s22 + $0x148] sm:$0xff] %v520_v41  ;;  %v524_v43 = vld [vmem:[%s4015_s7 + $0x358] sm:$0xff]  ;;  %v526_v44 = vld [vmem:[%s4015_s7 + $0x360] sm:$0xff] }
  0x49   : > { %523 = vst [vmem:[%s4020_s22 + $0x150] sm:$0xff] %v522_v42  ;;  %525 = vst [vmem:[%s4020_s22 + $0x158] sm:$0xff] %v524_v43  ;;  %v528_v45 = vld [vmem:[%s4015_s7 + $0x368] sm:$0xff]  ;;  %v530_v46 = vld [vmem:[%s4015_s7 + $0x370] sm:$0xff] }
  0x4a   : > { %527 = vst [vmem:[%s4020_s22 + $0x160] sm:$0xff] %v526_v44  ;;  %v532_v47 = vld [vmem:[%s4015_s7 + $0x378] sm:$0xff]  ;;  %529 = vst [vmem:[%s4020_s22 + $0x168] sm:$0xff] %v528_v45  ;;  %v534_v48 = vld [vmem:[%s4015_s7 + $0x480] sm:$0xff] }
  0x4b   : > { %531 = vst [vmem:[%s4020_s22 + $0x170] sm:$0xff] %v530_v46  ;;  %533 = vst [vmem:[%s4020_s22 + $0x178] sm:$0xff] %v532_v47  ;;  %v536_v49 = vld [vmem:[%s4015_s7 + $0x488] sm:$0xff]  ;;  %v538_v50 = vld [vmem:[%s4015_s7 + $0x490] sm:$0xff] }
  0x4c   : > { %535 = vst [vmem:[%s4020_s22 + $0x180] sm:$0xff] %v534_v48  ;;  %537 = vst [vmem:[%s4020_s22 + $0x188] sm:$0xff] %v536_v49  ;;  %v540_v51 = vld [vmem:[%s4015_s7 + $0x498] sm:$0xff]  ;;  %v542_v52 = vld [vmem:[%s4015_s7 + $0x4a0] sm:$0xff] }
  0x4d   : > { %539 = vst [vmem:[%s4020_s22 + $0x190] sm:$0xff] %v538_v50  ;;  %v544_v53 = vld [vmem:[%s4015_s7 + $0x4a8] sm:$0xff]  ;;  %541 = vst [vmem:[%s4020_s22 + $0x198] sm:$0xff] %v540_v51  ;;  %v546_v54 = vld [vmem:[%s4015_s7 + $0x4b0] sm:$0xff] }
  0x4e   : > { %543 = vst [vmem:[%s4020_s22 + $0x1a0] sm:$0xff] %v542_v52  ;;  %545 = vst [vmem:[%s4020_s22 + $0x1a8] sm:$0xff] %v544_v53  ;;  %v548_v55 = vld [vmem:[%s4015_s7 + $0x4b8] sm:$0xff]  ;;  %v550_v56 = vld [vmem:[%s4015_s7 + $0x4c0] sm:$0xff] }
  0x4f   : > { %547 = vst [vmem:[%s4020_s22 + $0x1b0] sm:$0xff] %v546_v54  ;;  %549 = vst [vmem:[%s4020_s22 + $0x1b8] sm:$0xff] %v548_v55  ;;  %v552_v57 = vld [vmem:[%s4015_s7 + $0x4c8] sm:$0xff]  ;;  %v554_v58 = vld [vmem:[%s4015_s7 + $0x4d0] sm:$0xff] }
  0x50   : > { %551 = vst [vmem:[%s4020_s22 + $0x1c0] sm:$0xff] %v550_v56  ;;  %v556_v59 = vld [vmem:[%s4015_s7 + $0x4d8] sm:$0xff]  ;;  %553 = vst [vmem:[%s4020_s22 + $0x1c8] sm:$0xff] %v552_v57  ;;  %v558_v60 = vld [vmem:[%s4015_s7 + $0x4e0] sm:$0xff] }
  0x51   : > { %555 = vst [vmem:[%s4020_s22 + $0x1d0] sm:$0xff] %v554_v58  ;;  %557 = vst [vmem:[%s4020_s22 + $0x1d8] sm:$0xff] %v556_v59  ;;  %v560_v61 = vld [vmem:[%s4015_s7 + $0x4e8] sm:$0xff]  ;;  %v562_v62 = vld [vmem:[%s4015_s7 + $0x4f0] sm:$0xff] }
  0x52   : > { %559 = vst [vmem:[%s4020_s22 + $0x1e0] sm:$0xff] %v558_v60  ;;  %561 = vst [vmem:[%s4020_s22 + $0x1e8] sm:$0xff] %v560_v61  ;;  %v564_v63 = vld [vmem:[%s4015_s7 + $0x4f8] sm:$0xff] }
  0x53   : > { %563 = vst [vmem:[%s4020_s22 + $0x1f0] sm:$0xff] %v562_v62  ;;  %565 = vst [vmem:[%s4020_s22 + $0x1f8] sm:$0xff] %v564_v63 }
  0x54 PF: > { %571 = sbr.rel (!%p3973_p4) target bundleno = 126 (0x7e), region = 78  ;;  %s573_s17 = sand.u32 (%p3973_p4), 1, %s3807_s28  }
  0x55   : > { %s2718_s23 = sshll.u32 (%p3973_p4), %s3823_s9, 4  ;;  %s2717_s16 = sshll.u32 (%p3973_p4), %s573_s17, 9 }
  0x56   : > { %s3555_s18 = smul.u32 (%p3973_p4), 192, %s3831_s11  ;;  %s4855_s2 = sld [smem:[#allocation19_spill]] (%p3973_p4) }
  0x57   : > { %s4160_s19 = scalar_lea.vmem (%p3973_p4), [#allocation7], %s2717_s16 }
  0x58   : > { %s578_s14 = sadd.s32 (%p3973_p4), %s3555_s18, %s2718_s23 }
  0x59   : > { %s2719_s15 = sshll.u32 (%p3973_p4), %s578_s14, 3 }
  0x5c   : > { %s4155_s1 = scalar_lea.vmem %s4855_s2, %s2719_s15 }
  0x5d   : > { %v734_v0 = vld [vmem:[%s4155_s1] sm:$0xff]  ;;  %v736_v1 = vld [vmem:[%s4155_s1 + $0x8] sm:$0xff]  ;;  %v738_v2 = vld [vmem:[%s4155_s1 + $0x10] sm:$0xff] }
  0x5e   : > { %735 = vst [vmem:[%s4160_s19] sm:$0xff] %v734_v0  ;;  %737 = vst [vmem:[%s4160_s19 + $0x8] sm:$0xff] %v736_v1  ;;  %v740_v3 = vld [vmem:[%s4155_s1 + $0x18] sm:$0xff]  ;;  %v742_v4 = vld [vmem:[%s4155_s1 + $0x20] sm:$0xff] }
  0x5f   : > { %739 = vst [vmem:[%s4160_s19 + $0x10] sm:$0xff] %v738_v2  ;;  %v744_v5 = vld [vmem:[%s4155_s1 + $0x28] sm:$0xff]  ;;  %741 = vst [vmem:[%s4160_s19 + $0x18] sm:$0xff] %v740_v3  ;;  %v746_v6 = vld [vmem:[%s4155_s1 + $0x30] sm:$0xff] }
  0x60   : > { %743 = vst [vmem:[%s4160_s19 + $0x20] sm:$0xff] %v742_v4  ;;  %745 = vst [vmem:[%s4160_s19 + $0x28] sm:$0xff] %v744_v5  ;;  %v748_v7 = vld [vmem:[%s4155_s1 + $0x38] sm:$0xff]  ;;  %v750_v8 = vld [vmem:[%s4155_s1 + $0x40] sm:$0xff] }
  0x61   : > { %747 = vst [vmem:[%s4160_s19 + $0x30] sm:$0xff] %v746_v6  ;;  %749 = vst [vmem:[%s4160_s19 + $0x38] sm:$0xff] %v748_v7  ;;  %v752_v9 = vld [vmem:[%s4155_s1 + $0x48] sm:$0xff]  ;;  %v754_v10 = vld [vmem:[%s4155_s1 + $0x50] sm:$0xff] }
  0x62   : > { %751 = vst [vmem:[%s4160_s19 + $0x40] sm:$0xff] %v750_v8  ;;  %v756_v11 = vld [vmem:[%s4155_s1 + $0x58] sm:$0xff]  ;;  %753 = vst [vmem:[%s4160_s19 + $0x48] sm:$0xff] %v752_v9  ;;  %v758_v12 = vld [vmem:[%s4155_s1 + $0x60] sm:$0xff] }
  0x63   : > { %755 = vst [vmem:[%s4160_s19 + $0x50] sm:$0xff] %v754_v10  ;;  %757 = vst [vmem:[%s4160_s19 + $0x58] sm:$0xff] %v756_v11  ;;  %v760_v13 = vld [vmem:[%s4155_s1 + $0x68] sm:$0xff]  ;;  %v762_v14 = vld [vmem:[%s4155_s1 + $0x70] sm:$0xff] }
  0x64   : > { %759 = vst [vmem:[%s4160_s19 + $0x60] sm:$0xff] %v758_v12  ;;  %761 = vst [vmem:[%s4160_s19 + $0x68] sm:$0xff] %v760_v13  ;;  %v764_v15 = vld [vmem:[%s4155_s1 + $0x78] sm:$0xff]  ;;  %v766_v16 = vld [vmem:[%s4155_s1 + $0x180] sm:$0xff] }
  0x65   : > { %763 = vst [vmem:[%s4160_s19 + $0x70] sm:$0xff] %v762_v14  ;;  %v768_v17 = vld [vmem:[%s4155_s1 + $0x188] sm:$0xff]  ;;  %765 = vst [vmem:[%s4160_s19 + $0x78] sm:$0xff] %v764_v15  ;;  %v770_v18 = vld [vmem:[%s4155_s1 + $0x190] sm:$0xff] }
  0x66   : > { %767 = vst [vmem:[%s4160_s19 + $0x80] sm:$0xff] %v766_v16  ;;  %769 = vst [vmem:[%s4160_s19 + $0x88] sm:$0xff] %v768_v17  ;;  %v772_v19 = vld [vmem:[%s4155_s1 + $0x198] sm:$0xff]  ;;  %v774_v20 = vld [vmem:[%s4155_s1 + $0x1a0] sm:$0xff] }
  0x67   : > { %771 = vst [vmem:[%s4160_s19 + $0x90] sm:$0xff] %v770_v18  ;;  %773 = vst [vmem:[%s4160_s19 + $0x98] sm:$0xff] %v772_v19  ;;  %v776_v21 = vld [vmem:[%s4155_s1 + $0x1a8] sm:$0xff]  ;;  %v778_v22 = vld [vmem:[%s4155_s1 + $0x1b0] sm:$0xff] }
  0x68   : > { %775 = vst [vmem:[%s4160_s19 + $0xa0] sm:$0xff] %v774_v20  ;;  %v780_v23 = vld [vmem:[%s4155_s1 + $0x1b8] sm:$0xff]  ;;  %777 = vst [vmem:[%s4160_s19 + $0xa8] sm:$0xff] %v776_v21  ;;  %v782_v24 = vld [vmem:[%s4155_s1 + $0x1c0] sm:$0xff] }
  0x69   : > { %779 = vst [vmem:[%s4160_s19 + $0xb0] sm:$0xff] %v778_v22  ;;  %781 = vst [vmem:[%s4160_s19 + $0xb8] sm:$0xff] %v780_v23  ;;  %v784_v25 = vld [vmem:[%s4155_s1 + $0x1c8] sm:$0xff]  ;;  %v786_v26 = vld [vmem:[%s4155_s1 + $0x1d0] sm:$0xff] }
  0x6a   : > { %783 = vst [vmem:[%s4160_s19 + $0xc0] sm:$0xff] %v782_v24  ;;  %785 = vst [vmem:[%s4160_s19 + $0xc8] sm:$0xff] %v784_v25  ;;  %v788_v27 = vld [vmem:[%s4155_s1 + $0x1d8] sm:$0xff]  ;;  %v790_v28 = vld [vmem:[%s4155_s1 + $0x1e0] sm:$0xff] }
  0x6b   : > { %787 = vst [vmem:[%s4160_s19 + $0xd0] sm:$0xff] %v786_v26  ;;  %v792_v29 = vld [vmem:[%s4155_s1 + $0x1e8] sm:$0xff]  ;;  %789 = vst [vmem:[%s4160_s19 + $0xd8] sm:$0xff] %v788_v27  ;;  %v794_v30 = vld [vmem:[%s4155_s1 + $0x1f0] sm:$0xff] }
  0x6c   : > { %791 = vst [vmem:[%s4160_s19 + $0xe0] sm:$0xff] %v790_v28  ;;  %793 = vst [vmem:[%s4160_s19 + $0xe8] sm:$0xff] %v792_v29  ;;  %v796_v31 = vld [vmem:[%s4155_s1 + $0x1f8] sm:$0xff]  ;;  %v798_v32 = vld [vmem:[%s4155_s1 + $0x300] sm:$0xff] }
  0x6d   : > { %795 = vst [vmem:[%s4160_s19 + $0xf0] sm:$0xff] %v794_v30  ;;  %797 = vst [vmem:[%s4160_s19 + $0xf8] sm:$0xff] %v796_v31  ;;  %v800_v33 = vld [vmem:[%s4155_s1 + $0x308] sm:$0xff]  ;;  %v802_v34 = vld [vmem:[%s4155_s1 + $0x310] sm:$0xff] }
  0x6e   : > { %799 = vst [vmem:[%s4160_s19 + $0x100] sm:$0xff] %v798_v32  ;;  %v804_v35 = vld [vmem:[%s4155_s1 + $0x318] sm:$0xff]  ;;  %801 = vst [vmem:[%s4160_s19 + $0x108] sm:$0xff] %v800_v33  ;;  %v806_v36 = vld [vmem:[%s4155_s1 + $0x320] sm:$0xff] }
  0x6f   : > { %803 = vst [vmem:[%s4160_s19 + $0x110] sm:$0xff] %v802_v34  ;;  %805 = vst [vmem:[%s4160_s19 + $0x118] sm:$0xff] %v804_v35  ;;  %v808_v37 = vld [vmem:[%s4155_s1 + $0x328] sm:$0xff]  ;;  %v810_v38 = vld [vmem:[%s4155_s1 + $0x330] sm:$0xff] }
  0x70   : > { %807 = vst [vmem:[%s4160_s19 + $0x120] sm:$0xff] %v806_v36  ;;  %809 = vst [vmem:[%s4160_s19 + $0x128] sm:$0xff] %v808_v37  ;;  %v812_v39 = vld [vmem:[%s4155_s1 + $0x338] sm:$0xff]  ;;  %v814_v40 = vld [vmem:[%s4155_s1 + $0x340] sm:$0xff] }
  0x71   : > { %811 = vst [vmem:[%s4160_s19 + $0x130] sm:$0xff] %v810_v38  ;;  %v816_v41 = vld [vmem:[%s4155_s1 + $0x348] sm:$0xff]  ;;  %813 = vst [vmem:[%s4160_s19 + $0x138] sm:$0xff] %v812_v39  ;;  %v818_v42 = vld [vmem:[%s4155_s1 + $0x350] sm:$0xff] }
  0x72   : > { %815 = vst [vmem:[%s4160_s19 + $0x140] sm:$0xff] %v814_v40  ;;  %817 = vst [vmem:[%s4160_s19 + $0x148] sm:$0xff] %v816_v41  ;;  %v820_v43 = vld [vmem:[%s4155_s1 + $0x358] sm:$0xff]  ;;  %v822_v44 = vld [vmem:[%s4155_s1 + $0x360] sm:$0xff] }
  0x73   : > { %819 = vst [vmem:[%s4160_s19 + $0x150] sm:$0xff] %v818_v42  ;;  %821 = vst [vmem:[%s4160_s19 + $0x158] sm:$0xff] %v820_v43  ;;  %v824_v45 = vld [vmem:[%s4155_s1 + $0x368] sm:$0xff]  ;;  %v826_v46 = vld [vmem:[%s4155_s1 + $0x370] sm:$0xff] }
  0x74   : > { %823 = vst [vmem:[%s4160_s19 + $0x160] sm:$0xff] %v822_v44  ;;  %v828_v47 = vld [vmem:[%s4155_s1 + $0x378] sm:$0xff]  ;;  %825 = vst [vmem:[%s4160_s19 + $0x168] sm:$0xff] %v824_v45  ;;  %v830_v48 = vld [vmem:[%s4155_s1 + $0x480] sm:$0xff] }
  0x75   : > { %827 = vst [vmem:[%s4160_s19 + $0x170] sm:$0xff] %v826_v46  ;;  %829 = vst [vmem:[%s4160_s19 + $0x178] sm:$0xff] %v828_v47  ;;  %v832_v49 = vld [vmem:[%s4155_s1 + $0x488] sm:$0xff]  ;;  %v834_v50 = vld [vmem:[%s4155_s1 + $0x490] sm:$0xff] }
  0x76   : > { %831 = vst [vmem:[%s4160_s19 + $0x180] sm:$0xff] %v830_v48  ;;  %833 = vst [vmem:[%s4160_s19 + $0x188] sm:$0xff] %v832_v49  ;;  %v836_v51 = vld [vmem:[%s4155_s1 + $0x498] sm:$0xff]  ;;  %v838_v52 = vld [vmem:[%s4155_s1 + $0x4a0] sm:$0xff] }
  0x77   : > { %835 = vst [vmem:[%s4160_s19 + $0x190] sm:$0xff] %v834_v50  ;;  %v840_v53 = vld [vmem:[%s4155_s1 + $0x4a8] sm:$0xff]  ;;  %837 = vst [vmem:[%s4160_s19 + $0x198] sm:$0xff] %v836_v51  ;;  %v842_v54 = vld [vmem:[%s4155_s1 + $0x4b0] sm:$0xff] }
  0x78   : > { %839 = vst [vmem:[%s4160_s19 + $0x1a0] sm:$0xff] %v838_v52  ;;  %841 = vst [vmem:[%s4160_s19 + $0x1a8] sm:$0xff] %v840_v53  ;;  %v844_v55 = vld [vmem:[%s4155_s1 + $0x4b8] sm:$0xff]  ;;  %v846_v56 = vld [vmem:[%s4155_s1 + $0x4c0] sm:$0xff] }
  0x79   : > { %843 = vst [vmem:[%s4160_s19 + $0x1b0] sm:$0xff] %v842_v54  ;;  %845 = vst [vmem:[%s4160_s19 + $0x1b8] sm:$0xff] %v844_v55  ;;  %v848_v57 = vld [vmem:[%s4155_s1 + $0x4c8] sm:$0xff]  ;;  %v850_v58 = vld [vmem:[%s4155_s1 + $0x4d0] sm:$0xff] }
  0x7a   : > { %847 = vst [vmem:[%s4160_s19 + $0x1c0] sm:$0xff] %v846_v56  ;;  %v852_v59 = vld [vmem:[%s4155_s1 + $0x4d8] sm:$0xff]  ;;  %849 = vst [vmem:[%s4160_s19 + $0x1c8] sm:$0xff] %v848_v57  ;;  %v854_v60 = vld [vmem:[%s4155_s1 + $0x4e0] sm:$0xff] }
  0x7b   : > { %851 = vst [vmem:[%s4160_s19 + $0x1d0] sm:$0xff] %v850_v58  ;;  %853 = vst [vmem:[%s4160_s19 + $0x1d8] sm:$0xff] %v852_v59  ;;  %v856_v61 = vld [vmem:[%s4155_s1 + $0x4e8] sm:$0xff]  ;;  %v858_v62 = vld [vmem:[%s4155_s1 + $0x4f0] sm:$0xff] }
  0x7c   : > { %855 = vst [vmem:[%s4160_s19 + $0x1e0] sm:$0xff] %v854_v60  ;;  %857 = vst [vmem:[%s4160_s19 + $0x1e8] sm:$0xff] %v856_v61  ;;  %v860_v63 = vld [vmem:[%s4155_s1 + $0x4f8] sm:$0xff] }
  0x7d   : > { %859 = vst [vmem:[%s4160_s19 + $0x1f0] sm:$0xff] %v858_v62  ;;  %861 = vst [vmem:[%s4160_s19 + $0x1f8] sm:$0xff] %v860_v63 }
  0x7e PF: > { %p2720_p1 = scmp.ge.s32.totalorder %s3835_s12, 1  ;;  %p866_p2 = scmp.lt.s32.totalorder %s3835_s12, 13 }
  0x80   : > { %p867_p3 = pnand %p2720_p1, %p866_p2 }
  0x81   : > { %s873_s7 = sand.u32 (!%p867_p3), 1, %s3803_s27   ;;  %s4839_s22 = sand.u32 (!%p867_p3), 1, %s3795_s25  }
  0x82   : > { %870 = sbr.rel (%p867_p3) target bundleno = 1840 (0x730), region = 116  ;;  %s2721_s17 = sshll.u32 (!%p867_p3), %s873_s7, 9 }
  0x83   : > { %s4293_s1 = sshll.u32 (!%p867_p3), %s4839_s22, 3  ;;  %p923_p4 = scmp.lt.s32.totalorder (!%p867_p3), %s3819_s8, 1 }
  0x84   : > { %p925_p5 = scmp.lt.s32.totalorder (!%p867_p3), %s3815_s30, 1  ;;  %s4304_s2 = scalar_lea.vmem (!%p867_p3), [#allocation6], %s2721_s17 }
  0x85   : > { %s4306_s27 = scalar_lea.vmem (!%p867_p3), [#allocation7], %s2721_s17  ;;  %s922_s7 = scalar_lea.vmem (!%p867_p3), [#allocation8], %s4293_s1 }
  0x86   : > { %p2726_p6 = scmp.ne.s32.totalorder (!%p867_p3), %s3811_s29, 0 }
  0x89   : > { %s924_s23 = scalar_select %p923_p4, %s3819_s8, 1 }
  0x8a   : > { %s926_s16 = scalar_select %p925_p5, %s3815_s30, 1 }
  0x8b   : > { %s2724_s18 = sshll.u32 %s924_s23, 1  ;;  %936 = sbr.rel (%p2726_p6) target bundleno = 526 (0x20e), region = 128  ;;  %v938_v0 = vld [vmem:[%s4827_s3] sm:$0xff] (!%p2726_p6)  ;;  %v939_v1 = vld [vmem:[%s4827_s3 + $0x8] sm:$0xff] (!%p2726_p6)  ;;  %vm953_vm0 = vcmask (!%p2726_p6), 523264   ;;  %v3837_v2 = vmov (!%p2726_p6), 0.0|0.0   ;;  %v1066_v23 = vlaneseq (!%p2726_p6) }
  0x8c   : > { %s928_s14 = sadd.s32 %s2724_s18, %s926_s16  ;;  %3298 = vmatprep.subr.bf16.mxu0 (!%p2726_p6), %v3837_v2  ;;  %v3299_v3 = vpack.c.bf16 (!%p2726_p6), %v939_v1, %v938_v0  ;;  %vm4318_vm1 = vmpackc.low (!%p2726_p6), %vm953_vm0, %vm953_vm0  ;;  %vm1202_vm2 = vcmask (!%p2726_p6), 7168   ;;  %vm3838_vm3 = vmmov (!%p2726_p6), 0   ;;  %v3839_v5 = vmov (!%p2726_p6), 0.0   ;;  %v940_v7 = vld [vmem:[%s4827_s3 + $0x10] sm:$0xff] (!%p2726_p6)  ;;  %v941_v8 = vld [vmem:[%s4827_s3 + $0x18] sm:$0xff] (!%p2726_p6) }
  0x8d   : > { %s2725_s15 = sshll.u32 %s928_s14, 3  ;;  %2996 = vmatprep.mubr.msk.f32.mxu0 (!%p2726_p6), %vm3838_vm3, %v3839_v5  ;;  %v3840_v6 = vmov (!%p2726_p6), -1e+30   ;;  %1207 = vst.msk [vmem:[#allocation4] sm:$0xff] (!%p2726_p6), %vm1202_vm2, %v3839_v5  ;;  %1208 = vst.msk [vmem:[#allocation4 + $0x8] sm:$0xff] (!%p2726_p6), %vm1202_vm2, %v3839_v5  ;;  %v3303_v9 = vpack.c.bf16 (!%p2726_p6), %v941_v8, %v940_v7  ;;  %v942_v10 = vld [vmem:[%s4827_s3 + $0x20] sm:$0xff] (!%p2726_p6) }
  0x8e   : > { %s4302_s19 = scalar_lea.vmem %s4824_s0, %s2725_s15  ;;  %1203 = vst.msk [vmem:[#allocation3] sm:$0xff] (!%p2726_p6), %vm1202_vm2, %v3840_v6  ;;  %1204 = vst.msk [vmem:[#allocation3 + $0x8] sm:$0xff] (!%p2726_p6), %vm1202_vm2, %v3840_v6  ;;  %3301 = vmatpush3.bf16.xpose.msk.msra.mxu0 (!%p2726_p6), %vm4318_vm1, %v3299_v3  ;;  %v943_v11 = vld [vmem:[%s4827_s3 + $0x28] sm:$0xff] (!%p2726_p6)  ;;  %v944_v13 = vld [vmem:[%s4827_s3 + $0x30] sm:$0xff] (!%p2726_p6)  ;;  %vm1197_vm4 = vcmask (!%p2726_p6), 130048   ;;  %s3841_s14 = smov (!%p2726_p6), 80  }
  0x8f   : > { %1205 = vst.msk [vmem:[#allocation3 + $0x10] sm:$0xff] (!%p2726_p6), %vm1202_vm2, %v3840_v6  ;;  %1206 = vst.msk [vmem:[#allocation3 + $0x18] sm:$0xff] (!%p2726_p6), %vm1202_vm2, %v3840_v6  ;;  %3302 = vmatprep.subr.bf16.mxu0 (!%p2726_p6), %v3837_v2  ;;  %v3307_v12 = vpack.c.bf16 (!%p2726_p6), %v943_v11, %v942_v10  ;;  %v945_v14 = vld [vmem:[%s4827_s3 + $0x38] sm:$0xff] (!%p2726_p6)  ;;  %v937_v16 = vld [vmem:[%s4302_s19] sm:$0xff] (!%p2726_p6)  ;;  %s3842_s19 = smov (!%p2726_p6), 112   ;;  %s3843_s15 = smov (!%p2726_p6), 96  }
  0x90   : > { %1209 = vst.msk [vmem:[#allocation4 + $0x10] sm:$0xff] (!%p2726_p6), %vm1202_vm2, %v3839_v5  ;;  %1210 = vst.msk [vmem:[#allocation4 + $0x18] sm:$0xff] (!%p2726_p6), %vm1202_vm2, %v3839_v5  ;;  %v3311_v15 = vpack.c.bf16 (!%p2726_p6), %v945_v14, %v944_v13  ;;  %v2727_v17 = vld [vmem:[%s4828_s4] ss:$0 sm:$0xff] (!%p2726_p6)  ;;  %v3844_v21 = vmov (!%p2726_p6), 1983009808  }
  0x91   : > { %1211 = vst.msk [vmem:[#allocation5] sm:$0xff] (!%p2726_p6), %vm1197_vm4, %v3839_v5  ;;  %1212 = vst.msk [vmem:[#allocation5 + $0x8] sm:$0xff] (!%p2726_p6), %vm1197_vm4, %v3839_v5  ;;  %v1064_v22 = vunpack.c.l.s4 (!%p2726_p6), %v3844_v21  ;;  %v3845_v24 = vmov (!%p2726_p6), 1934713408   ;;  %v1067_v27 = vshrl.u32 (!%p2726_p6), %v1066_v23, 7 }
  0x92   : > { %1213 = vst.msk [vmem:[#allocation5 + $0x10] sm:$0xff] %vm1197_vm4, %v3839_v5  ;;  %1214 = vst.msk [vmem:[#allocation5 + $0x18] sm:$0xff] %vm1197_vm4, %v3839_v5  ;;  %v1096_v25 = vunpack.c.l.s4 %v3845_v24 }
  0x93   : > { %v1065_v26 = vunpack.c.0.s8 %v1064_v22 }
  0x94   : > { %v1097_v30 = vunpack.c.0.s8 %v1096_v25 }
  0x95   : > { %v1068_v31 = vsub.s32 %v1065_v26, %v1067_v27 }
  0x96   : > { %3305 = vmatpush3.bf16.xpose.msk.msra.mxu0 %vm4318_vm1, %v3303_v9  ;;  %v1100_v37 = vsub.s32 %v1097_v30, %v1067_v27 }
  0x97   : > { %3306 = vmatprep.subr.bf16.mxu0 %v3837_v2 }
  0x9e   : > { %3309 = vmatpush3.bf16.xpose.msk.msra.mxu0 %vm4318_vm1, %v3307_v12 }
  0x9f   : > { %3310 = vmatprep.subr.bf16.mxu0 %v3837_v2 }
  0xa6   : > { %3313 = vmatpush3.bf16.xpose.msk.msra.mxu0 %vm4318_vm1, %v3311_v15 }
  0xad   : > { %2997 = vmatmul.mubr.msk.f32.vlgmr.msra.gmra.mrb[0].mxu0 %vm953_vm0, %v937_v16 }
 0x180   : > { %v1047_v18 = vpop.f32.mrb[0].mxu0 }
 0x181   : > { %v1048_v19 = vadd.f32 %v2727_v17, %v1047_v18  ;;  %v2998_v20 = vpop.f32.mrb[1].mxu0 }
 0x183   : > { %1058 = vrot.lane.b32.xlu1 %v1048_v19, %s3841_s14  ;;  %1052 = vrot.lane.b32.xlu0 %v1048_v19, %s3842_s19 }
 0x187   : > { %1055 = vrot.lane.b32.xlu0 %v1048_v19, %s3843_s15 }
 0x1f5   : > { %v1059_v28 = vpop.permute.xlu1 %1058  ;;  %v1053_v29 = vpop.permute.xlu0 %1052 }
 0x1f6   : > { %v1077_v32 = vcombine.low %v1053_v29, %v1059_v28  ;;  %v1078_v33 = vcombine.high %v1053_v29, %v1059_v28 }
 0x1f8   : > { %v1085_v38 = vrot.slane %v1077_v32, %v1068_v31  ;;  %v1092_v39 = vrot.slane %v1078_v33, %v1068_v31 }
 0x1f9   : > { %v1056_v34 = vpop.permute.xlu0 %1055 }
 0x1fa   : > { %v1061_v35 = vcombine.low %v1048_v19, %v1056_v34  ;;  %v1062_v36 = vcombine.high %v1048_v19, %v1056_v34 }
 0x1fc   : > { %v1069_v40 = vrot.slane %v1061_v35, %v1068_v31  ;;  %v1076_v41 = vrot.slane %v1062_v36, %v1068_v31 }
 0x1fe   : > { %v1093_v42 = vcombine.low %v1069_v40, %v1085_v38  ;;  %v1094_v43 = vcombine.high %v1069_v40, %v1085_v38  ;;  %v1109_v44 = vcombine.low %v1076_v41, %v1092_v39  ;;  %v1110_v45 = vcombine.high %v1076_v41, %v1092_v39 }
 0x200   : > { %v1101_v46 = vrot.slane %v1093_v42, %v1100_v37  ;;  %v1108_v47 = vrot.slane %v1094_v43, %v1100_v37  ;;  %v1117_v48 = vrot.slane %v1109_v44, %v1100_v37  ;;  %v1124_v49 = vrot.slane %v1110_v45, %v1100_v37 }
 0x202   : > { %v1129_v50 = vcombine.low %v1101_v46, %v1108_v47  ;;  %v2737_v51 = vcombine.high %v1101_v46, %v1108_v47  ;;  %v1145_v52 = vcombine.low %v1117_v48, %v1124_v49  ;;  %v2738_v53 = vcombine.high %v1117_v48, %v1124_v49 }
 0x204   : > { %v1136_v54 = vrot.slane %v1129_v50, %v1068_v31  ;;  %v1144_v55 = vrot.slane %v2737_v51, %v1068_v31  ;;  %v1152_v56 = vrot.slane %v1145_v52, %v1068_v31  ;;  %v1160_v57 = vrot.slane %v2738_v53, %v1068_v31 }
 0x206   : > { %v1161_v58 = vcombine.low %v1136_v54, %v1144_v55  ;;  %v1162_v59 = vcombine.high %v1136_v54, %v1144_v55  ;;  %v1177_v60 = vcombine.low %v1152_v56, %v1160_v57  ;;  %v1178_v61 = vcombine.high %v1152_v56, %v1160_v57 }
 0x208   : > { %v1169_v62 = vrot.slane %v1161_v58, %v1100_v37  ;;  %v1176_v63 = vrot.slane %v1162_v59, %v1100_v37  ;;  %v1185_v0 = vrot.slane %v1177_v60, %v1100_v37  ;;  %v1192_v1 = vrot.slane %v1178_v61, %v1100_v37 }
 0x20a   : > { %v1193_v2 = vcombine.low %v1169_v62, %v1185_v0  ;;  %v1194_v3 = vcombine.high %v1169_v62, %v1185_v0  ;;  %v1195_v4 = vcombine.low %v1176_v63, %v1192_v1  ;;  %v1196_v5 = vcombine.high %v1176_v63, %v1192_v1 }
 0x20c   : > { %1198 = vst.msk [vmem:[#allocation2] sm:$0xff] %vm1197_vm4, %v1193_v2  ;;  %1199 = vst.msk [vmem:[#allocation2 + $0x8] sm:$0xff] %vm1197_vm4, %v1194_v3 }
 0x20d   : > { %1200 = vst.msk [vmem:[#allocation2 + $0x10] sm:$0xff] %vm1197_vm4, %v1195_v4  ;;  %1201 = vst.msk [vmem:[#allocation2 + $0x18] sm:$0xff] %vm1197_vm4, %v1196_v5 }
 0x20e PF: > { %v1215_v6 = vld [vmem:[%s4304_s2] sm:$0xff]  ;;  %v1216_v7 = vld [vmem:[%s4304_s2 + $0x8] sm:$0xff]  ;;  %vm1347_vm5 = vcmask 130048   ;;  %v3846_v9 = vmov 0.0|0.0   ;;  %vm3847_vm7 = vmmov 0   ;;  %v3848_v14 = vmov 0.0  }
 0x20f   : > { %v1231_v8 = vld [vmem:[%s4304_s2 + $0x80] sm:$0xff]  ;;  %3314 = vmatprep.subr.bf16.mxu0 %v3846_v9  ;;  %v3315_v10 = vpack.c.bf16 %v1216_v7, %v1215_v6  ;;  %vm4367_vm6 = vmpackc.low %vm1347_vm5, %vm1347_vm5  ;;  %3346 = vmatprep.subr.bf16.mxu1 %v3846_v9  ;;  %v1232_v12 = vld [vmem:[%s4304_s2 + $0x88] sm:$0xff]  ;;  %vm1924_vm9 = vcmask 7168   ;;  %p2808_p7 = scmp.ne.s32.totalorder %s3811_s29, 2 }
 0x210   : > { %v3347_v13 = vpack.c.bf16 %v1232_v12, %v1231_v8  ;;  %3031 = vmatprep.mubr.msk.f32.mxu0 %vm3847_vm7, %v3848_v14  ;;  %3066 = vmatprep.mubr.msk.f32.mxu1 %vm3847_vm7, %v3848_v14  ;;  %v1217_v15 = vld [vmem:[%s4304_s2 + $0x10] sm:$0xff]  ;;  %v1218_v16 = vld [vmem:[%s4304_s2 + $0x18] sm:$0xff]  ;;  %v1219_v21 = vld [vmem:[%s4304_s2 + $0x20] sm:$0xff]  ;;  %vm2469_vm10 = vcmask (!%p2808_p7), 523264   ;;  %vm3854_vm12 = vmmov (!%p2808_p7), 0   ;;  %s3856_s10 = smov (!%p2808_p7), 32  }
 0x211   : > { %3317 = vmatpush3.bf16.xpose.msk.msra.mxu0 %vm4367_vm6, %v3315_v10  ;;  %v1233_v17 = vld [vmem:[%s4304_s2 + $0x90] sm:$0xff]  ;;  %v1234_v18 = vld [vmem:[%s4304_s2 + $0x98] sm:$0xff]  ;;  %v3319_v19 = vpack.c.bf16 %v1218_v16, %v1217_v15  ;;  %v1220_v22 = vld [vmem:[%s4304_s2 + $0x28] sm:$0xff]  ;;  %s3857_s20 = smov (!%p2808_p7), 16   ;;  %s3858_s23 = smov (!%p2808_p7), 48   ;;  %vm2450_vm13 = vcmask (!%p2808_p7), 261120  }
 0x212   : > { %3349 = vmatpush3.bf16.xpose.msk.msra.mxu1 %vm4367_vm6, %v3347_v13  ;;  %3318 = vmatprep.subr.bf16.mxu0 %v3846_v9  ;;  %v3351_v20 = vpack.c.bf16 %v1234_v18, %v1233_v17  ;;  %v1235_v23 = vld [vmem:[%s4304_s2 + $0xa0] sm:$0xff]  ;;  %v1236_v24 = vld [vmem:[%s4304_s2 + $0xa8] sm:$0xff]  ;;  %v3323_v25 = vpack.c.bf16 %v1220_v22, %v1219_v21  ;;  %v1221_v27 = vld [vmem:[%s4304_s2 + $0x30] sm:$0xff]  ;;  %vm2452_vm14 = vcmask (!%p2808_p7), 392192  }
 0x213   : > { %3350 = vmatprep.subr.bf16.mxu1 %v3846_v9  ;;  %v3355_v26 = vpack.c.bf16 %v1236_v24, %v1235_v23  ;;  %v1222_v28 = vld [vmem:[%s4304_s2 + $0x38] sm:$0xff]  ;;  %v1237_v29 = vld [vmem:[%s4304_s2 + $0xb0] sm:$0xff]  ;;  %v1223_v33 = vld [vmem:[%s4304_s2 + $0x40] sm:$0xff] }
 0x214   : > { %v1238_v30 = vld [vmem:[%s4304_s2 + $0xb8] sm:$0xff]  ;;  %v3327_v31 = vpack.c.bf16 %v1222_v28, %v1221_v27  ;;  %v1224_v34 = vld [vmem:[%s4304_s2 + $0x48] sm:$0xff]  ;;  %v1239_v35 = vld [vmem:[%s4304_s2 + $0xc0] sm:$0xff] }
 0x215   : > { %v3359_v32 = vpack.c.bf16 %v1238_v30, %v1237_v29  ;;  %v1240_v36 = vld [vmem:[%s4304_s2 + $0xc8] sm:$0xff]  ;;  %v3331_v37 = vpack.c.bf16 %v1224_v34, %v1223_v33  ;;  %v1225_v39 = vld [vmem:[%s4304_s2 + $0x50] sm:$0xff]  ;;  %v1226_v40 = vld [vmem:[%s4304_s2 + $0x58] sm:$0xff] }
 0x216   : > { %v3363_v38 = vpack.c.bf16 %v1240_v36, %v1239_v35  ;;  %v1241_v41 = vld [vmem:[%s4304_s2 + $0xd0] sm:$0xff]  ;;  %v1242_v42 = vld [vmem:[%s4304_s2 + $0xd8] sm:$0xff]  ;;  %v3335_v43 = vpack.c.bf16 %v1226_v40, %v1225_v39  ;;  %v1227_v45 = vld [vmem:[%s4304_s2 + $0x60] sm:$0xff] }
 0x217   : > { %v3367_v44 = vpack.c.bf16 %v1242_v42, %v1241_v41  ;;  %v1228_v46 = vld [vmem:[%s4304_s2 + $0x68] sm:$0xff]  ;;  %v1243_v47 = vld [vmem:[%s4304_s2 + $0xe0] sm:$0xff]  ;;  %v1229_v51 = vld [vmem:[%s4304_s2 + $0x70] sm:$0xff] }
 0x218   : > { %v1244_v48 = vld [vmem:[%s4304_s2 + $0xe8] sm:$0xff]  ;;  %v3339_v49 = vpack.c.bf16 %v1228_v46, %v1227_v45  ;;  %v1230_v52 = vld [vmem:[%s4304_s2 + $0x78] sm:$0xff]  ;;  %v1245_v53 = vld [vmem:[%s4304_s2 + $0xf0] sm:$0xff] }
 0x219   : > { %3321 = vmatpush3.bf16.xpose.msk.msra.mxu0 %vm4367_vm6, %v3319_v19  ;;  %v3371_v50 = vpack.c.bf16 %v1244_v48, %v1243_v47  ;;  %v1246_v54 = vld [vmem:[%s4304_s2 + $0xf8] sm:$0xff]  ;;  %v3343_v55 = vpack.c.bf16 %v1230_v52, %v1229_v51  ;;  %v1247_v57 = vld [vmem:[%s4304_s2 + $0x100] sm:$0xff]  ;;  %v1248_v58 = vld [vmem:[%s4304_s2 + $0x108] sm:$0xff]  ;;  %v1833_v48 = vlaneseq }
 0x21a   : > { %3353 = vmatpush3.bf16.xpose.msk.msra.mxu1 %vm4367_vm6, %v3351_v20  ;;  %3322 = vmatprep.subr.bf16.mxu0 %v3846_v9  ;;  %v3375_v56 = vpack.c.bf16 %v1246_v54, %v1245_v53  ;;  %v1263_v59 = vld [vmem:[%s4304_s2 + $0x180] sm:$0xff]  ;;  %v1264_v60 = vld [vmem:[%s4304_s2 + $0x188] sm:$0xff]  ;;  %v3379_v62 = vpack.c.bf16 %v1248_v58, %v1247_v57  ;;  %v1249_v1 = vld [vmem:[%s4304_s2 + $0x110] sm:$0xff]  ;;  %v3849_v57 = vmov 0  }
 0x21b   : > { %3354 = vmatprep.subr.bf16.mxu1 %v3846_v9  ;;  %v1343_v61 = vld [vmem:[#allocation2] sm:$0xff]  ;;  %v1344_v63 = vld [vmem:[#allocation2 + $0x8] sm:$0xff]  ;;  %v3411_v0 = vpack.c.bf16 %v1264_v60, %v1263_v59  ;;  %v1250_v2 = vld [vmem:[%s4304_s2 + $0x118] sm:$0xff]  ;;  %v1834_v11 = vand.u32 127, %v1833_v48  ;;  %3681 = vset.pattern.permute.xlu0 %v3849_v57 }
 0x21c   : > { %v1265_v3 = vld [vmem:[%s4304_s2 + $0x190] sm:$0xff]  ;;  %v1266_v4 = vld [vmem:[%s4304_s2 + $0x198] sm:$0xff]  ;;  %v3383_v5 = vpack.c.bf16 %v1250_v2, %v1249_v1  ;;  %v1251_v7 = vld [vmem:[%s4304_s2 + $0x120] sm:$0xff]  ;;  %3682 = vset.pattern.permute.xlu1 %v3849_v57 }
 0x21d   : > { %v3415_v6 = vpack.c.bf16 %v1266_v4, %v1265_v3  ;;  %v1252_v8 = vld [vmem:[%s4304_s2 + $0x128] sm:$0xff]  ;;  %v1267_v10 = vld [vmem:[%s4304_s2 + $0x1a0] sm:$0xff]  ;;  %v1253_v16 = vld [vmem:[%s4304_s2 + $0x130] sm:$0xff] }
 0x21e   : > { %v1268_v12 = vld [vmem:[%s4304_s2 + $0x1a8] sm:$0xff]  ;;  %v3387_v13 = vpack.c.bf16 %v1252_v8, %v1251_v7  ;;  %v1254_v17 = vld [vmem:[%s4304_s2 + $0x138] sm:$0xff]  ;;  %v1269_v18 = vld [vmem:[%s4304_s2 + $0x1b0] sm:$0xff] }
 0x21f   : > { %v3419_v15 = vpack.c.bf16 %v1268_v12, %v1267_v10  ;;  %v1270_v19 = vld [vmem:[%s4304_s2 + $0x1b8] sm:$0xff]  ;;  %v3391_v20 = vpack.c.bf16 %v1254_v17, %v1253_v16  ;;  %v1255_v22 = vld [vmem:[%s4304_s2 + $0x140] sm:$0xff]  ;;  %v1256_v23 = vld [vmem:[%s4304_s2 + $0x148] sm:$0xff] }
 0x220   : > { %v3423_v21 = vpack.c.bf16 %v1270_v19, %v1269_v18  ;;  %v1271_v24 = vld [vmem:[%s4304_s2 + $0x1c0] sm:$0xff]  ;;  %v1257_v28 = vld [vmem:[%s4304_s2 + $0x150] sm:$0xff]  ;;  %v1258_v29 = vld [vmem:[%s4304_s2 + $0x158] sm:$0xff] }
 0x221   : > { %3325 = vmatpush3.bf16.xpose.msk.msra.mxu0 %vm4367_vm6, %v3323_v25  ;;  %v1272_v25 = vld [vmem:[%s4304_s2 + $0x1c8] sm:$0xff]  ;;  %v1273_v30 = vld [vmem:[%s4304_s2 + $0x1d0] sm:$0xff]  ;;  %v1259_v34 = vld [vmem:[%s4304_s2 + $0x160] sm:$0xff] }
 0x222   : > { %3357 = vmatpush3.bf16.xpose.msk.msra.mxu1 %vm4367_vm6, %v3355_v26  ;;  %3326 = vmatprep.subr.bf16.mxu0 %v3846_v9  ;;  %v3395_v26 = vpack.c.bf16 %v1256_v23, %v1255_v22  ;;  %v3427_v27 = vpack.c.bf16 %v1272_v25, %v1271_v24  ;;  %v1260_v35 = vld [vmem:[%s4304_s2 + $0x168] sm:$0xff]  ;;  %v1275_v36 = vld [vmem:[%s4304_s2 + $0x1e0] sm:$0xff]  ;;  %v1261_v40 = vld [vmem:[%s4304_s2 + $0x170] sm:$0xff] }
 0x223   : > { %3358 = vmatprep.subr.bf16.mxu1 %v3846_v9  ;;  %v1262_v41 = vld [vmem:[%s4304_s2 + $0x178] sm:$0xff]  ;;  %v1277_v42 = vld [vmem:[%s4304_s2 + $0x1f0] sm:$0xff]  ;;  %v1280_v1 = vld [vmem:[%s4306_s27 + $0x8] sm:$0xff] }
 0x224   : > { %v1345_v46 = vld [vmem:[#allocation2 + $0x10] sm:$0xff]  ;;  %v1346_v47 = vld [vmem:[#allocation2 + $0x18] sm:$0xff]  ;;  %v1299_v17 = vld [vmem:[%s4306_s27 + $0xa0] sm:$0xff] }
 0x225   : > { %v1281_v2 = vld [vmem:[%s4306_s27 + $0x10] sm:$0xff]  ;;  %v1282_v4 = vld [vmem:[%s4306_s27 + $0x18] sm:$0xff]  ;;  %v1300_v18 = vld [vmem:[%s4306_s27 + $0xa8] sm:$0xff] }
 0x226   : > { %v1297_v8 = vld [vmem:[%s4306_s27 + $0x90] sm:$0xff]  ;;  %v3446_v10 = vpack.c.bf16 %v1282_v4, %v1281_v2  ;;  %v1298_v12 = vld [vmem:[%s4306_s27 + $0x98] sm:$0xff]  ;;  %v3473_v22 = vpack.c.bf16 %v1300_v18, %v1299_v17  ;;  %v1844_v24 = vld [vmem:[#allocation3] sm:$0xff] }
 0x227   : > { %v3470_v16 = vpack.c.bf16 %v1298_v12, %v1297_v8  ;;  %v1309_v57 = vld [vmem:[%s4306_s27 + $0xf0] sm:$0xff]  ;;  %v1311_v18 = vld [vmem:[%s4306_s27 + $0x100] sm:$0xff]  ;;  %vm4718_vm11 = vmpackc.low (!%p2808_p7), %vm2469_vm10, %vm2469_vm10 }
 0x229   : > { %3329 = vmatpush3.bf16.xpose.msk.msra.mxu0 %vm4367_vm6, %v3327_v31  ;;  %v1274_v31 = vld [vmem:[%s4304_s2 + $0x1d8] sm:$0xff] }
 0x22a   : > { %3361 = vmatpush3.bf16.xpose.msk.msra.mxu1 %vm4367_vm6, %v3359_v32  ;;  %3330 = vmatprep.subr.bf16.mxu0 %v3846_v9  ;;  %v3399_v32 = vpack.c.bf16 %v1258_v29, %v1257_v28  ;;  %v3431_v33 = vpack.c.bf16 %v1274_v31, %v1273_v30  ;;  %v1301_v28 = vld [vmem:[%s4306_s27 + $0xb0] sm:$0xff]  ;;  %v1302_v31 = vld [vmem:[%s4306_s27 + $0xb8] sm:$0xff] }
 0x22b   : > { %3362 = vmatprep.subr.bf16.mxu1 %v3846_v9 }
 0x231   : > { %3333 = vmatpush3.bf16.xpose.msk.msra.mxu0 %vm4367_vm6, %v3331_v37  ;;  %v1276_v37 = vld [vmem:[%s4304_s2 + $0x1e8] sm:$0xff] }
 0x232   : > { %3365 = vmatpush3.bf16.xpose.msk.msra.mxu1 %vm4367_vm6, %v3363_v38  ;;  %3334 = vmatprep.subr.bf16.mxu0 %v3846_v9  ;;  %v3403_v38 = vpack.c.bf16 %v1260_v35, %v1259_v34  ;;  %v3435_v39 = vpack.c.bf16 %v1276_v37, %v1275_v36  ;;  %v1289_v35 = vld [vmem:[%s4306_s27 + $0x50] sm:$0xff]  ;;  %v1290_v36 = vld [vmem:[%s4306_s27 + $0x58] sm:$0xff]  ;;  %v1303_v37 = vld [vmem:[%s4306_s27 + $0xc0] sm:$0xff] }
 0x233   : > { %3366 = vmatprep.subr.bf16.mxu1 %v3846_v9 }
 0x239   : > { %3337 = vmatpush3.bf16.xpose.msk.msra.mxu0 %vm4367_vm6, %v3335_v43  ;;  %v1278_v43 = vld [vmem:[%s4304_s2 + $0x1f8] sm:$0xff]  ;;  %s2807_s2 = sshll.u32 %s3811_s29, 7 }
 0x23a   : > { %3369 = vmatpush3.bf16.xpose.msk.msra.mxu1 %vm4367_vm6, %v3367_v44  ;;  %3338 = vmatprep.subr.bf16.mxu0 %v3846_v9  ;;  %v3407_v44 = vpack.c.bf16 %v1262_v41, %v1261_v40  ;;  %v3439_v45 = vpack.c.bf16 %v1278_v43, %v1277_v42  ;;  %v1304_v40 = vld [vmem:[%s4306_s27 + $0xc8] sm:$0xff]  ;;  %v1291_v43 = vld [vmem:[%s4306_s27 + $0x60] sm:$0xff] }
 0x23b   : > { %3370 = vmatprep.subr.bf16.mxu1 %v3846_v9  ;;  %v3479_v41 = vpack.c.bf16 %v1304_v40, %v1303_v37  ;;  %v1331_v37 = vld [vmem:[%s4306_s27 + $0x1a0] sm:$0xff] }
 0x241   : > { %3341 = vmatpush3.bf16.xpose.msk.msra.mxu0 %vm4367_vm6, %v3339_v49  ;;  %v1835_v49 = vstv %s2807_s2 }
 0x242   : > { %3373 = vmatpush3.bf16.xpose.msk.msra.mxu1 %vm4367_vm6, %v3371_v50  ;;  %3342 = vmatprep.subr.bf16.mxu0 %v3846_v9  ;;  %v1836_v50 = vadd.s32 %v1835_v49, %v1834_v11  ;;  %v1293_v49 = vld [vmem:[%s4306_s27 + $0x70] sm:$0xff] }
 0x243   : > { %3374 = vmatprep.subr.bf16.mxu1 %v3846_v9 }
 0x244   : > { %vm1837_vm8 = vcmp.lt.s32.totalorder %v1836_v50, 300  ;;  %v1294_v50 = vld [vmem:[%s4306_s27 + $0x78] sm:$0xff] }
 0x249   : > { %3345 = vmatpush3.bf16.xpose.msk.msra.mxu0 %vm4367_vm6, %v3343_v55 }
 0x24a   : > { %3377 = vmatpush3.bf16.xpose.msk.msra.mxu1 %vm4367_vm6, %v3375_v56  ;;  %3378 = vmatprep.subr.bf16.mxu0 %v3846_v9 }
 0x24b   : > { %3410 = vmatprep.subr.bf16.mxu1 %v3846_v9 }
 0x250   : > { %3032 = vmatmul.mubr.msk.f32.vlgmr.msra.gmra.mrb[0].mxu0 %vm1347_vm5, %v1343_v61 }
 0x251   : > { %3381 = vmatpush3.bf16.xpose.msk.msra.mxu0 %vm4367_vm6, %v3379_v62  ;;  %3067 = vmatmul.mubr.msk.f32.vlgmr.msra.gmra.mrb[0].mxu1 %vm1347_vm5, %v1344_v63 }
 0x252   : > { %3413 = vmatpush3.bf16.xpose.msk.msra.mxu1 %vm4367_vm6, %v3411_v0  ;;  %3382 = vmatprep.subr.bf16.mxu0 %v3846_v9  ;;  %v1279_v0 = vld [vmem:[%s4306_s27] sm:$0xff] }
 0x253   : > { %3414 = vmatprep.subr.bf16.mxu1 %v3846_v9  ;;  %3101 = vmatprep.mubr.msk.f32.mxu0 %vm3847_vm7, %v3848_v14  ;;  %v3443_v3 = vpack.c.bf16 %v1280_v1, %v1279_v0  ;;  %v1846_v0 = vld [vmem:[#allocation3 + $0x10] sm:$0xff] }
 0x254   : > { %3136 = vmatprep.mubr.msk.f32.mxu1 %vm3847_vm7, %v3848_v14 }
 0x259   : > { %3385 = vmatpush3.bf16.xpose.msk.msra.mxu0 %vm4367_vm6, %v3383_v5  ;;  %v1295_v5 = vld [vmem:[%s4306_s27 + $0x80] sm:$0xff] }
 0x25a   : > { %3417 = vmatpush3.bf16.xpose.msk.msra.mxu1 %vm4367_vm6, %v3415_v6  ;;  %3386 = vmatprep.subr.bf16.mxu0 %v3846_v9  ;;  %v1296_v6 = vld [vmem:[%s4306_s27 + $0x88] sm:$0xff] }
 0x25b   : > { %3418 = vmatprep.subr.bf16.mxu1 %v3846_v9  ;;  %v3467_v7 = vpack.c.bf16 %v1296_v6, %v1295_v5 }
 0x261   : > { %3389 = vmatpush3.bf16.xpose.msk.msra.mxu0 %vm4367_vm6, %v3387_v13  ;;  %v1283_v13 = vld [vmem:[%s4306_s27 + $0x20] sm:$0xff] }
 0x262   : > { %3421 = vmatpush3.bf16.xpose.msk.msra.mxu1 %vm4367_vm6, %v3419_v15  ;;  %3390 = vmatprep.subr.bf16.mxu0 %v3846_v9  ;;  %v1284_v15 = vld [vmem:[%s4306_s27 + $0x28] sm:$0xff] }
 0x263   : > { %3422 = vmatprep.subr.bf16.mxu1 %v3846_v9  ;;  %v3449_v19 = vpack.c.bf16 %v1284_v15, %v1283_v13 }
 0x269   : > { %3393 = vmatpush3.bf16.xpose.msk.msra.mxu0 %vm4367_vm6, %v3391_v20  ;;  %v1285_v20 = vld [vmem:[%s4306_s27 + $0x30] sm:$0xff] }
 0x26a   : > { %3425 = vmatpush3.bf16.xpose.msk.msra.mxu1 %vm4367_vm6, %v3423_v21  ;;  %3394 = vmatprep.subr.bf16.mxu0 %v3846_v9  ;;  %v1286_v21 = vld [vmem:[%s4306_s27 + $0x38] sm:$0xff] }
 0x26b   : > { %3426 = vmatprep.subr.bf16.mxu1 %v3846_v9  ;;  %v3452_v23 = vpack.c.bf16 %v1286_v21, %v1285_v20  ;;  %v1313_v21 = vld [vmem:[%s4306_s27 + $0x110] sm:$0xff] }
 0x271   : > { %3397 = vmatpush3.bf16.xpose.msk.msra.mxu0 %vm4367_vm6, %v3395_v26  ;;  %v1287_v26 = vld [vmem:[%s4306_s27 + $0x40] sm:$0xff] }
 0x272   : > { %3429 = vmatpush3.bf16.xpose.msk.msra.mxu1 %vm4367_vm6, %v3427_v27  ;;  %3398 = vmatprep.subr.bf16.mxu0 %v3846_v9  ;;  %v1288_v27 = vld [vmem:[%s4306_s27 + $0x48] sm:$0xff] }
 0x273   : > { %3430 = vmatprep.subr.bf16.mxu1 %v3846_v9  ;;  %v3455_v30 = vpack.c.bf16 %v1288_v27, %v1287_v26  ;;  %v1315_v26 = vld [vmem:[%s4306_s27 + $0x120] sm:$0xff] }
 0x279   : > { %3401 = vmatpush3.bf16.xpose.msk.msra.mxu0 %vm4367_vm6, %v3399_v32  ;;  %v4588_v32 = vld [vmem:[#allocation3 + $0x8] sm:$0xff] }
 0x27a   : > { %3433 = vmatpush3.bf16.xpose.msk.msra.mxu1 %vm4367_vm6, %v3431_v33  ;;  %3402 = vmatprep.subr.bf16.mxu0 %v3846_v9  ;;  %v3476_v33 = vpack.c.bf16 %v1302_v31, %v1301_v28  ;;  %v1316_v28 = vld [vmem:[%s4306_s27 + $0x128] sm:$0xff] }
 0x27b   : > { %3434 = vmatprep.subr.bf16.mxu1 %v3846_v9 }
 0x281   : > { %3405 = vmatpush3.bf16.xpose.msk.msra.mxu0 %vm4367_vm6, %v3403_v38 }
 0x282   : > { %3437 = vmatpush3.bf16.xpose.msk.msra.mxu1 %vm4367_vm6, %v3435_v39  ;;  %3406 = vmatprep.subr.bf16.mxu0 %v3846_v9  ;;  %v3458_v39 = vpack.c.bf16 %v1290_v36, %v1289_v35  ;;  %v1317_v35 = vld [vmem:[%s4306_s27 + $0x130] sm:$0xff]  ;;  %v1318_v36 = vld [vmem:[%s4306_s27 + $0x138] sm:$0xff] }
 0x283   : > { %3438 = vmatprep.subr.bf16.mxu1 %v3846_v9  ;;  %v3500_v40 = vpack.c.bf16 %v1318_v36, %v1317_v35 }
 0x289   : > { %3409 = vmatpush3.bf16.xpose.msk.msra.mxu0 %vm4367_vm6, %v3407_v44  ;;  %v1292_v44 = vld [vmem:[%s4306_s27 + $0x68] sm:$0xff] }
 0x28a   : > { %3441 = vmatpush3.bf16.xpose.msk.msra.mxu1 %vm4367_vm6, %v3439_v45  ;;  %3442 = vmatprep.subr.bf16.mxu0 %v3846_v9  ;;  %v1305_v45 = vld [vmem:[%s4306_s27 + $0xd0] sm:$0xff] }
 0x28b   : > { %3466 = vmatprep.subr.bf16.mxu1 %v3846_v9 }
 0x290   : > { %3102 = vmatmul.mubr.msk.f32.vlgmr.msra.gmra.mrb[2].mxu0 %vm1347_vm5, %v1345_v46  ;;  %v3461_v46 = vpack.c.bf16 %v1292_v44, %v1291_v43  ;;  %v1319_v43 = vld [vmem:[%s4306_s27 + $0x140] sm:$0xff]  ;;  %v1320_v44 = vld [vmem:[%s4306_s27 + $0x148] sm:$0xff] }
 0x291   : > { %3137 = vmatmul.mubr.msk.f32.vlgmr.msra.gmra.mrb[2].mxu1 %vm1347_vm5, %v1346_v47  ;;  %3171 = vmatprep.mubr.msk.f32.mxu0 %vm3847_vm7, %v3848_v14  ;;  %v1306_v47 = vld [vmem:[%s4306_s27 + $0xd8] sm:$0xff] }
 0x292   : > { %3206 = vmatprep.mubr.msk.f32.mxu1 %vm3847_vm7, %v3848_v14  ;;  %3444 = vmatpush3.bf16.msra.mxu0 %v3443_v3  ;;  %v3482_v11 = vpack.c.bf16 %v1306_v47, %v1305_v45  ;;  %v4622_v3 = vld [vmem:[#allocation3 + $0x18] sm:$0xff]  ;;  %v3503_v47 = vpack.c.bf16 %v1320_v44, %v1319_v43 }
 0x293   : > { %3445 = vmatprep.subr.bf16.mxu0 %v3846_v9  ;;  %3468 = vmatpush3.bf16.msra.mxu1 %v3467_v7 }
 0x294   : > { %3469 = vmatprep.subr.bf16.mxu1 %v3846_v9 }
 0x296   : > { %3447 = vmatpush3.bf16.msra.mxu0 %v3446_v10 }
 0x297   : > { %3448 = vmatprep.subr.bf16.mxu0 %v3846_v9  ;;  %3471 = vmatpush3.bf16.msra.mxu1 %v3470_v16 }
 0x298   : > { %3472 = vmatprep.subr.bf16.mxu1 %v3846_v9 }
 0x29a   : > { %3450 = vmatpush3.bf16.msra.mxu0 %v3449_v19  ;;  %v1312_v19 = vld [vmem:[%s4306_s27 + $0x108] sm:$0xff] }
 0x29b   : > { %3451 = vmatprep.subr.bf16.mxu0 %v3846_v9  ;;  %3474 = vmatpush3.bf16.msra.mxu1 %v3473_v22  ;;  %v3491_v20 = vpack.c.bf16 %v1312_v19, %v1311_v18  ;;  %v1314_v22 = vld [vmem:[%s4306_s27 + $0x118] sm:$0xff] }
 0x29c   : > { %3475 = vmatprep.subr.bf16.mxu1 %v3846_v9 }
 0x29e   : > { %3453 = vmatpush3.bf16.msra.mxu0 %v3452_v23  ;;  %v1327_v23 = vld [vmem:[%s4306_s27 + $0x180] sm:$0xff] }
 0x29f   : > { %3454 = vmatprep.subr.bf16.mxu0 %v3846_v9  ;;  %3477 = vmatpush3.bf16.msra.mxu1 %v3476_v33  ;;  %v3497_v33 = vpack.c.bf16 %v1316_v28, %v1315_v26 }
 0x2a0   : > { %3478 = vmatprep.subr.bf16.mxu1 %v3846_v9 }
 0x2a2   : > { %3456 = vmatpush3.bf16.msra.mxu0 %v3455_v30  ;;  %v1330_v30 = vld [vmem:[%s4306_s27 + $0x198] sm:$0xff] }
 0x2a3   : > { %3457 = vmatprep.subr.bf16.mxu0 %v3846_v9  ;;  %3480 = vmatpush3.bf16.msra.mxu1 %v3479_v41 }
 0x2a4   : > { %3481 = vmatprep.subr.bf16.mxu1 %v3846_v9 }
 0x2a6   : > { %3459 = vmatpush3.bf16.msra.mxu0 %v3458_v39  ;;  %v1332_v39 = vld [vmem:[%s4306_s27 + $0x1a8] sm:$0xff] }
 0x2a7   : > { %3460 = vmatprep.subr.bf16.mxu0 %v3846_v9  ;;  %3483 = vmatpush3.bf16.msra.mxu1 %v3482_v11  ;;  %v3521_v41 = vpack.c.bf16 %v1332_v39, %v1331_v37  ;;  %v1930_v39 = vld [vmem:[#allocation5 + $0x8] sm:$0xff] }
 0x2a8   : > { %3484 = vmatprep.subr.bf16.mxu1 %v3846_v9 }
 0x2aa   : > { %3462 = vmatpush3.bf16.msra.mxu0 %v3461_v46  ;;  %v1333_v46 = vld [vmem:[%s4306_s27 + $0x1b0] sm:$0xff] }
 0x2ab   : > { %3463 = vmatprep.subr.bf16.mxu0 %v3846_v9 }
 0x323   : > { %v1465_v51 = vpop.f32.mrb[0].mxu0 }
 0x324   : > { %v3033_v52 = vpop.f32.mrb[1].mxu0  ;;  %v4548_v53 = vsel %vm1837_vm8, %v1465_v51, -inf  ;;  %v1586_v54 = vpop.f32.mrb[0].mxu1  ;;  %v1307_v51 = vld [vmem:[%s4306_s27 + $0xe0] sm:$0xff] }
 0x325   : > { %1848 = vmax.xlane.f32.xlu0 %v4548_v53  ;;  %v3068_v55 = vpop.f32.mrb[1].mxu1  ;;  %v4552_v56 = vsel %vm1837_vm8, %v1586_v54, -inf  ;;  %v3464_v52 = vpack.c.bf16 %v1294_v50, %v1293_v49  ;;  %v1308_v54 = vld [vmem:[%s4306_s27 + $0xe8] sm:$0xff]  ;;  %v1321_v49 = vld [vmem:[%s4306_s27 + $0x150] sm:$0xff]  ;;  %v1322_v50 = vld [vmem:[%s4306_s27 + $0x158] sm:$0xff] }
 0x326   : > { %v3485_v55 = vpack.c.bf16 %v1308_v54, %v1307_v51  ;;  %v1335_v51 = vld [vmem:[%s4306_s27 + $0x1c0] sm:$0xff] }
 0x327   : > { %3465 = vmatpush3.bf16.msra.mxu0 %v3464_v52  ;;  %v1323_v54 = vld [vmem:[%s4306_s27 + $0x160] sm:$0xff] }
 0x328   : > { %3486 = vmatpush3.bf16.msra.mxu1 %v3485_v55  ;;  %3490 = vmatprep.subr.bf16.mxu0 %v3846_v9  ;;  %v1324_v55 = vld [vmem:[%s4306_s27 + $0x168] sm:$0xff] }
 0x329   : > { %1850 = vmax.xlane.f32.xlu0 %v4552_v56  ;;  %3487 = vmatprep.subr.bf16.mxu1 %v3846_v9 }
 0x363   : > { %v1707_v58 = vpop.f32.mrb[2].mxu0 }
 0x364   : > { %v3103_v59 = vpop.f32.mrb[3].mxu0  ;;  %v4556_v60 = vsel %vm1837_vm8, %v1707_v58, -inf  ;;  %v1828_v61 = vpop.f32.mrb[2].mxu1  ;;  %v1310_v58 = vld [vmem:[%s4306_s27 + $0xf8] sm:$0xff] }
 0x365   : > { %1852 = vmax.xlane.f32.xlu1 %v4556_v60  ;;  %v3138_v62 = vpop.f32.mrb[3].mxu1  ;;  %v4560_v63 = vsel %vm1837_vm8, %v1828_v61, -inf  ;;  %v3488_v59 = vpack.c.bf16 %v1310_v58, %v1309_v57  ;;  %v1337_v57 = vld [vmem:[%s4306_s27 + $0x1d0] sm:$0xff]  ;;  %v1338_v58 = vld [vmem:[%s4306_s27 + $0x1d8] sm:$0xff] }
 0x367   : > { %3489 = vmatpush3.bf16.msra.mxu1 %v3488_v59  ;;  %v3509_v59 = vpack.c.bf16 %v1324_v55, %v1323_v54 }
 0x368   : > { %3514 = vmatprep.subr.bf16.mxu1 %v3846_v9 }
 0x369   : > { %1854 = vmax.xlane.f32.xlu1 %v4560_v63 }
 0x3b2   : > { %v1849_v25 = vpop.xlane.xlu0 %1848 }
 0x3b3   : > { %v1856_v29 = vmax.f32 %v1844_v24, %v1849_v25 }
 0x3b5   : > { %2245 = vst.msk [vmem:[#allocation3] sm:$0xff] %vm1924_vm9, %v1856_v29  ;;  %1874 = vperm.xlu0 %3681, %v1856_v29   ;;  %v1860_v61 = vsub.f32 %v1844_v24, %v1856_v29  ;;  %v1328_v24 = vld [vmem:[%s4306_s27 + $0x188] sm:$0xff]  ;;  %v1329_v29 = vld [vmem:[%s4306_s27 + $0x190] sm:$0xff] }
 0x3b6   : > { %v1851_v34 = vpop.xlane.xlu0 %1850 }
 0x3b7   : > { %v4596_v38 = vmax.f32 %v4588_v32, %v1851_v34  ;;  %v1864_v62 = vmul.f32 1.442695, %v1860_v61  ;;  %v3518_v34 = vpack.c.bf16 %v1330_v30, %v1329_v29  ;;  %v3530_v61 = vpack.c.bf16 %v1338_v58, %v1337_v57 }
 0x3b9   : > { %v1861_v42 = vsub.f32 %v4588_v32, %v4596_v38  ;;  %2246 = vst.msk [vmem:[#allocation3 + $0x8] sm:$0xff] %vm1924_vm9, %v4596_v38  ;;  %1879 = vperm.xlu1 %3682, %v4596_v38   ;;  %3683 = vpow2.f32 %v1864_v62  ;;  %v1336_v32 = vld [vmem:[%s4306_s27 + $0x1c8] sm:$0xff]  ;;  %v1325_v62 = vld [vmem:[%s4306_s27 + $0x170] sm:$0xff] }
 0x3ba   : > { %v3527_v52 = vpack.c.bf16 %v1336_v32, %v1335_v51 }
 0x3bb   : > { %v1866_v45 = vmul.f32 1.442695, %v1861_v42  ;;  %v3506_v42 = vpack.c.bf16 %v1322_v50, %v1321_v49  ;;  %v1932_v50 = vld [vmem:[#allocation5 + $0x18] sm:$0xff] }
 0x3c3   : > { %v4633_v8 = vpop.eup %3683 }
 0x3f2   : > { %v1853_v1 = vpop.xlane.xlu1 %1852 }
 0x3f3   : > { %v1858_v2 = vmax.f32 %v1846_v0, %v1853_v1  ;;  %v1339_v1 = vld [vmem:[%s4306_s27 + $0x1e0] sm:$0xff] }
 0x3f5   : > { %v1862_v4 = vsub.f32 %v1846_v0, %v1858_v2  ;;  %2247 = vst.msk [vmem:[#allocation3 + $0x10] sm:$0xff] %vm1924_vm9, %v1858_v2  ;;  %1884 = vperm.xlu1 %3682, %v1858_v2   ;;  %v1326_v0 = vld [vmem:[%s4306_s27 + $0x178] sm:$0xff]  ;;  %v1340_v2 = vld [vmem:[%s4306_s27 + $0x1e8] sm:$0xff] }
 0x3f6   : > { %v1855_v5 = vpop.xlane.xlu1 %1854 }
 0x3f7   : > { %v4626_v6 = vmax.f32 %v4622_v3, %v1855_v5  ;;  %v1868_v27 = vmul.f32 1.442695, %v1862_v4  ;;  %v3512_v5 = vpack.c.bf16 %v1326_v0, %v1325_v62  ;;  %v3850_v62 = vmov (!%p2808_p7), 0  }
 0x3f9   : > { %v1863_v7 = vsub.f32 %v4622_v3, %v4626_v6  ;;  %2248 = vst.msk [vmem:[#allocation3 + $0x18] sm:$0xff] %vm1924_vm9, %v4626_v6  ;;  %1889 = vperm.xlu1 %3682, %v4626_v6   ;;  %v1906_v3 = vld [vmem:[#allocation4 + $0x10] sm:$0xff] }
 0x3fd   : > { %1935 = vperm.xlu1 %3682, %v4633_v8  }
 0x434   : > { %v1875_v10 = vpop.permute.xlu0 %1874 }
 0x435   : > { %v1892_v12 = vsub.f32 %v4548_v53, %v1875_v10  ;;  %v3494_v53 = vpack.c.bf16 %v1314_v22, %v1313_v21  ;;  %v3533_v10 = vpack.c.bf16 %v1340_v2, %v1339_v1 }
 0x437   : > { %v1896_v13 = vmul.f32 1.442695, %v1892_v12  ;;  %v1341_v12 = vld [vmem:[%s4306_s27 + $0x1f0] sm:$0xff] }
 0x438   : > { %v1880_v15 = vpop.permute.xlu1 %1879 }
 0x439   : > { %3685 = vpow2.f32 %v1896_v13  ;;  %v1893_v16 = vsub.f32 %v4552_v56, %v1880_v15  ;;  %v3515_v56 = vpack.c.bf16 %v1328_v24, %v1327_v23  ;;  %v1342_v13 = vld [vmem:[%s4306_s27 + $0x1f8] sm:$0xff] }
 0x43a   : > { %v3536_v15 = vpack.c.bf16 %v1342_v13, %v1341_v12 }
 0x43b   : > { %v1898_v17 = vmul.f32 1.442695, %v1893_v16 }
 0x43d   : > { %3687 = vpow2.f32 %v1898_v17 }
 0x43e   : > { %3689 = vpow2.f32 %v1868_v27 }
 0x43f   : > { %3691 = vpow2.f32 %v1866_v45 }
 0x443   : > { %v3686_v25 = vpop.eup %3685 }
 0x444   : > { %3172 = vmatmul.mubr.f32.vlgmr.msra.gmra.mrb[4].mxu0 %v3686_v25  ;;  %1912 = vadd.xlane.f32.xlu1 %v3686_v25  ;;  %v1904_v25 = vld [vmem:[#allocation4] sm:$0xff] }
 0x445   : > { %3492 = vmatpush3.bf16.msra.mxu0 %v3491_v20  ;;  %3241 = vmatprep.mubr.msk.f32.mxu0 %vm3847_vm7, %v3848_v14 }
 0x446   : > { %3493 = vmatprep.subr.bf16.mxu0 %v3846_v9 }
 0x447   : > { %v3688_v31 = vpop.eup %3687 }
 0x448   : > { %1914 = vadd.xlane.f32.xlu0 %v3688_v31  ;;  %3207 = vmatmul.mubr.f32.vlgmr.msra.gmra.mrb[4].mxu1 %v3688_v31  ;;  %v4674_v38 = vpop.eup %3689  ;;  %v1907_v31 = vld [vmem:[#allocation4 + $0x18] sm:$0xff] }
 0x449   : > { %3495 = vmatpush3.bf16.msra.mxu0 %v3494_v53  ;;  %3516 = vmatpush3.bf16.msra.mxu1 %v3515_v56  ;;  %v3692_v4 = vpop.eup %3691  ;;  %v1908_v53 = vmul.f32 %v4633_v8, %v1904_v25  ;;  %v1905_v56 = vld [vmem:[#allocation4 + $0x8] sm:$0xff]  ;;  %v1910_v6 = vmul.f32 %v4674_v38, %v1906_v3  ;;  %v2461_v3 = vld [vmem:[%s4829_s5 + $0x38] sm:$0xff] (!%p2808_p7) }
 0x44a   : > { %3496 = vmatprep.subr.bf16.mxu0 %v3846_v9  ;;  %3517 = vmatprep.subr.bf16.mxu1 %v3846_v9  ;;  %v1909_v27 = vmul.f32 %v3692_v4, %v1905_v56  ;;  %v2457_v56 = vld [vmem:[%s4829_s5 + $0x18] sm:$0xff] (!%p2808_p7) }
 0x44b   : > { %3276 = vmatprep.mubr.msk.f32.mxu1 %vm3847_vm7, %v3848_v14  ;;  %v1334_v14 = vld [vmem:[%s4306_s27 + $0x1b8] sm:$0xff] }
 0x44c   : > { %v3524_v11 = vpack.c.bf16 %v1334_v14, %v1333_v46 }
 0x44d   : > { %3498 = vmatpush3.bf16.msra.mxu0 %v3497_v33  ;;  %3519 = vmatpush3.bf16.msra.mxu1 %v3518_v34  ;;  %v1929_v34 = vld [vmem:[#allocation5] sm:$0xff] }
 0x44e   : > { %3499 = vmatprep.subr.bf16.mxu0 %v3846_v9  ;;  %3520 = vmatprep.subr.bf16.mxu1 %v3846_v9 }
 0x451   : > { %3501 = vmatpush3.bf16.msra.mxu0 %v3500_v40  ;;  %3522 = vmatpush3.bf16.msra.mxu1 %v3521_v41 }
 0x452   : > { %3502 = vmatprep.subr.bf16.mxu0 %v3846_v9  ;;  %3523 = vmatprep.subr.bf16.mxu1 %v3846_v9 }
 0x455   : > { %1945 = vperm.xlu1 %3682, %v4674_v38   ;;  %3504 = vmatpush3.bf16.msra.mxu0 %v3503_v47 }
 0x456   : > { %3525 = vmatpush3.bf16.msra.mxu1 %v3524_v11  ;;  %3505 = vmatprep.subr.bf16.mxu0 %v3846_v9  ;;  %v1931_v11 = vld [vmem:[#allocation5 + $0x10] sm:$0xff] }
 0x457   : > { %3526 = vmatprep.subr.bf16.mxu1 %v3846_v9 }
 0x459   : > { %3507 = vmatpush3.bf16.msra.mxu0 %v3506_v42 }
 0x45a   : > { %3528 = vmatpush3.bf16.msra.mxu1 %v3527_v52  ;;  %3508 = vmatprep.subr.bf16.mxu0 %v3846_v9 }
 0x45b   : > { %3529 = vmatprep.subr.bf16.mxu1 %v3846_v9 }
 0x45d   : > { %3510 = vmatpush3.bf16.msra.mxu0 %v3509_v59 }
 0x45e   : > { %1940 = vperm.xlu0 %3681, %v3692_v4   ;;  %3531 = vmatpush3.bf16.msra.mxu1 %v3530_v61 }
 0x45f   : > { %3511 = vmatprep.subr.bf16.mxu0 %v3846_v9  ;;  %3532 = vmatprep.subr.bf16.mxu1 %v3846_v9 }
 0x461   : > { %3513 = vmatpush3.bf16.msra.mxu0 %v3512_v5 }
 0x462   : > { %3534 = vmatpush3.bf16.msra.mxu1 %v3533_v10  ;;  %3699 = vset.pattern.permute.xlu0 (!%p2808_p7), %v3850_v62 }
 0x463   : > { %3535 = vmatprep.subr.bf16.mxu1 %v3846_v9  ;;  %v1870_v9 = vmul.f32 1.442695, %v1863_v7 }
 0x466   : > { %3537 = vmatpush3.bf16.msra.mxu1 %v3536_v15 }
 0x474   : > { %v1885_v16 = vpop.permute.xlu1 %1884 }
 0x475   : > { %v1894_v17 = vsub.f32 %v4556_v60, %v1885_v16 }
 0x477   : > { %v1900_v18 = vmul.f32 1.442695, %v1894_v17 }
 0x478   : > { %v1890_v19 = vpop.permute.xlu1 %1889 }
 0x479   : > { %3693 = vpow2.f32 %v1900_v18  ;;  %v1895_v20 = vsub.f32 %v4560_v63, %v1890_v19 }
 0x47b   : > { %v1902_v21 = vmul.f32 1.442695, %v1895_v20 }
 0x47c   : > { %v1936_v60 = vpop.permute.xlu1 %1935 }
 0x47d   : > { %3695 = vpow2.f32 %v1902_v21  ;;  %v1953_v36 = vmul.f32 %v1936_v60, %v1929_v34  ;;  %v3851_v60 = vmov (!%p2808_p7), 0.0|0.0  }
 0x47e   : > { %3697 = vpow2.f32 %v1870_v9  ;;  %v2454_v9 = vld [vmem:[%s4829_s5] sm:$0xff] (!%p2808_p7)  ;;  %3538 = vmatprep.subr.bf16.mxu0 (!%p2808_p7), %v3851_v60 }
 0x483   : > { %v3694_v22 = vpop.eup %3693 }
 0x484   : > { %1916 = vadd.xlane.f32.xlu1 %v3694_v22  ;;  %3242 = vmatmul.mubr.f32.vlgmr.msra.gmra.mrb[6].mxu0 %v3694_v22 }
 0x487   : > { %v3696_v23 = vpop.eup %3695 }
 0x488   : > { %1918 = vadd.xlane.f32.xlu1 %v3696_v23  ;;  %3277 = vmatmul.mubr.f32.vlgmr.msra.gmra.mrb[6].mxu1 %v3696_v23  ;;  %v3698_v24 = vpop.eup %3697 }
 0x489   : > { %v1911_v8 = vmul.f32 %v3698_v24, %v1907_v31 }
 0x499   : > { %1950 = vperm.xlu1 %3682, %v3698_v24   ;;  %v2455_v24 = vld [vmem:[%s4829_s5 + $0x8] sm:$0xff] (!%p2808_p7) }
 0x49a   : > { %v3539_v25 = vpack.c.bf16 (!%p2808_p7), %v2455_v24, %v2454_v9 }
 0x49c   : > { %3541 = vmatpush3.bf16.xpose.msk.msra.mxu0 (!%p2808_p7), %vm4718_vm11, %v3539_v25 }
 0x49d   : > { %3700 = vset.pattern.permute.xlu1 (!%p2808_p7), %v3850_v62  ;;  %3542 = vmatprep.subr.bf16.mxu0 (!%p2808_p7), %v3851_v60 }
 0x4d1   : > { %v1913_v63 = vpop.xlane.xlu1 %1912 }
 0x4d2   : > { %v1920_v26 = vadd.f32 %v1913_v63, %v1908_v53  ;;  %v2456_v63 = vld [vmem:[%s4829_s5 + $0x10] sm:$0xff] (!%p2808_p7) }
 0x4d4   : > { %1925 = vst.msk [vmem:[#allocation4] sm:$0xff] %vm1924_vm9, %v1920_v26  ;;  %v3543_v26 = vpack.c.bf16 (!%p2808_p7), %v2457_v56, %v2456_v63 }
 0x4d5   : > { %v1915_v28 = vpop.xlane.xlu0 %1914  ;;  %v1946_v30 = vpop.permute.xlu1 %1945 }
 0x4d6   : > { %v1921_v29 = vadd.f32 %v1915_v28, %v1909_v27  ;;  %v1955_v49 = vmul.f32 %v1946_v30, %v1931_v11  ;;  %3545 = vmatpush3.bf16.xpose.msk.msra.mxu0 (!%p2808_p7), %vm4718_vm11, %v3543_v26  ;;  %v2458_v27 = vld [vmem:[%s4829_s5 + $0x20] sm:$0xff] (!%p2808_p7)  ;;  %v2459_v28 = vld [vmem:[%s4829_s5 + $0x28] sm:$0xff] (!%p2808_p7)  ;;  %v2460_v30 = vld [vmem:[%s4829_s5 + $0x30] sm:$0xff] (!%p2808_p7) }
 0x4d7   : > { %3546 = vmatprep.subr.bf16.mxu0 (!%p2808_p7), %v3851_v60 }
 0x4d8   : > { %1926 = vst.msk [vmem:[#allocation4 + $0x8] sm:$0xff] %vm1924_vm9, %v1921_v29  ;;  %v3547_v29 = vpack.c.bf16 (!%p2808_p7), %v2459_v28, %v2458_v27 }
 0x4db   : > { %v2253_v59 = vld [vmem:[#allocation4] sm:$0xff] (!%p2808_p7) }
 0x4dd   : > { %v1941_v40 = vpop.permute.xlu0 %1940 }
 0x4de   : > { %v1954_v45 = vmul.f32 %v1941_v40, %v1930_v39  ;;  %3549 = vmatpush3.bf16.xpose.msk.msra.mxu0 (!%p2808_p7), %vm4718_vm11, %v3547_v29 }
 0x4df   : > { %v2254_v0 = vld [vmem:[#allocation4 + $0x8] sm:$0xff] (!%p2808_p7)  ;;  %3550 = vmatprep.subr.bf16.mxu0 (!%p2808_p7), %v3851_v60 }
 0x511   : > { %v1917_v7 = vpop.xlane.xlu1 %1916 }
 0x512   : > { %v1922_v33 = vadd.f32 %v1917_v7, %v1910_v6  ;;  %v3551_v6 = vpack.c.bf16 (!%p2808_p7), %v2461_v3, %v2460_v30  ;;  %v3852_v7 = vmov (!%p2808_p7), 1983009808  }
 0x513   : > { %v2304_v31 = vunpack.c.l.s4 (!%p2808_p7), %v3852_v7  ;;  %v2811_v7 = vld [vmem:[%s4830_s6] ss:$0 sm:$0xff] (!%p2808_p7) }
 0x514   : > { %1927 = vst.msk [vmem:[#allocation4 + $0x10] sm:$0xff] %vm1924_vm9, %v1922_v33  ;;  %3553 = vmatpush3.bf16.xpose.msk.msra.mxu0 (!%p2808_p7), %vm4718_vm11, %v3551_v6 }
 0x515   : > { %v1919_v35 = vpop.xlane.xlu1 %1918  ;;  %v2305_v40 = vunpack.c.0.s8 (!%p2808_p7), %v2304_v31 }
 0x516   : > { %v1923_v37 = vadd.f32 %v1919_v35, %v1911_v8 }
 0x517   : > { %v2023_v41 = vpop.f32.mrb[4].mxu0 }
 0x518   : > { %1928 = vst.msk [vmem:[#allocation4 + $0x18] sm:$0xff] %vm1924_vm9, %v1923_v37  ;;  %v2237_v43 = vadd.f32 %v2023_v41, %v1953_v36  ;;  %v3173_v44 = vpop.f32.mrb[5].mxu0  ;;  %v3853_v36 = vmov (!%p2808_p7), 1934713408   ;;  %v2307_v41 = vshrl.u32 (!%p2808_p7), %v1833_v48, 7 }
 0x519   : > { %v1951_v51 = vpop.permute.xlu1 %1950  ;;  %v2336_v37 = vunpack.c.l.s4 (!%p2808_p7), %v3853_v36 }
 0x51a   : > { %2241 = vst.msk [vmem:[#allocation5] sm:$0xff] %vm1347_vm5, %v2237_v43  ;;  %v1956_v52 = vmul.f32 %v1951_v51, %v1932_v50 }
 0x51b   : > { %v2093_v46 = vpop.f32.mrb[4].mxu1  ;;  %v2255_v58 = vld [vmem:[#allocation4 + $0x10] sm:$0xff] (!%p2808_p7) }
 0x51c   : > { %v2238_v14 = vadd.f32 %v2093_v46, %v1954_v45  ;;  %v3208_v47 = vpop.f32.mrb[5].mxu1  ;;  %3701 = vrcp.f32 (!%p2808_p7), %v2255_v58 }
 0x51d   : > { %3703 = vrcp.f32 (!%p2808_p7), %v2253_v59  ;;  %v2337_v47 = vunpack.c.0.s8 (!%p2808_p7), %v2336_v37 }
 0x51e   : > { %2242 = vst.msk [vmem:[#allocation5 + $0x8] sm:$0xff] %vm1347_vm5, %v2238_v14 }
 0x51f   : > { %v2256_v61 = vld [vmem:[#allocation4 + $0x18] sm:$0xff] (!%p2808_p7) }
 0x520   : > { %3705 = vrcp.f32 (!%p2808_p7), %v2256_v61 }
 0x521   : > { %3707 = vrcp.f32 (!%p2808_p7), %v2254_v0  ;;  %v2273_v34 = vld [vmem:[#allocation5] sm:$0xff] (!%p2808_p7) }
 0x525   : > { %v2274_v45 = vld [vmem:[#allocation5 + $0x8] sm:$0xff] (!%p2808_p7) }
 0x526   : > { %v3702_v1 = vpop.eup (!%p2808_p7), %3701 }
 0x527   : > { %v3704_v2 = vpop.eup (!%p2808_p7), %3703  ;;  %v2263_v4 = vmul.f32 (!%p2808_p7), %v3702_v1, %v2255_v58 }
 0x528   : > { %v2261_v10 = vmul.f32 (!%p2808_p7), %v3704_v2, %v2253_v59 }
 0x529   : > { %v2267_v13 = vsub.f32 (!%p2808_p7), 2.0, %v2263_v4 }
 0x52a   : > { %v3706_v5 = vpop.eup (!%p2808_p7), %3705  ;;  %v2265_v16 = vsub.f32 (!%p2808_p7), 2.0, %v2261_v10 }
 0x52b   : > { %v3708_v12 = vpop.eup (!%p2808_p7), %3707  ;;  %v2264_v15 = vmul.f32 (!%p2808_p7), %v3706_v5, %v2256_v61  ;;  %v2271_v18 = vmul.f32 (!%p2808_p7), %v3702_v1, %v2267_v13 }
 0x52c   : > { %v2262_v17 = vmul.f32 (!%p2808_p7), %v3708_v12, %v2254_v0  ;;  %v2269_v20 = vmul.f32 (!%p2808_p7), %v3704_v2, %v2265_v16 }
 0x52d   : > { %v2268_v19 = vsub.f32 (!%p2808_p7), 2.0, %v2264_v15  ;;  %2289 = vperm.xlu1 (!%p2808_p7), %3700, %v2271_v18  }
 0x52e   : > { %v2266_v21 = vsub.f32 (!%p2808_p7), 2.0, %v2262_v17  ;;  %2279 = vperm.xlu0 (!%p2808_p7), %3699, %v2269_v20  }
 0x52f   : > { %v2272_v22 = vmul.f32 (!%p2808_p7), %v3706_v5, %v2268_v19  ;;  %v3855_v19 = vmov (!%p2808_p7), 0.0  }
 0x530   : > { %v2270_v23 = vmul.f32 (!%p2808_p7), %v3708_v12, %v2266_v21  ;;  %3295 = vmatprep.mubr.msk.f32.mxu0 (!%p2808_p7), %vm3854_vm12, %v3855_v19 }
 0x531   : > { %2294 = vperm.xlu1 (!%p2808_p7), %3700, %v2272_v22  }
 0x532   : > { %2284 = vperm.xlu0 (!%p2808_p7), %3699, %v2270_v23  }
 0x557   : > { %v2163_v32 = vpop.f32.mrb[6].mxu0 }
 0x558   : > { %v2239_v38 = vadd.f32 %v2163_v32, %v1955_v49  ;;  %v3243_v42 = vpop.f32.mrb[7].mxu0  ;;  %2252 = sbr.rel (%p2808_p7) target bundleno = 1813 (0x715), region = 132  ;;  %v2308_v49 = vsub.s32 (!%p2808_p7), %v2305_v40, %v2307_v41 }
 0x55a   : > { %2243 = vst.msk [vmem:[#allocation5 + $0x10] sm:$0xff] %vm1347_vm5, %v2239_v38 }
 0x55b   : > { %v2233_v54 = vpop.f32.mrb[6].mxu1 }
 0x55c   : > { %v2240_v55 = vadd.f32 %v2233_v54, %v1956_v52  ;;  %v3278_v57 = vpop.f32.mrb[7].mxu1  ;;  %v2340_v52 = vsub.s32 (!%p2808_p7), %v2337_v47, %v2307_v41 }
 0x55e   : > { %2244 = vst.msk [vmem:[#allocation5 + $0x18] sm:$0xff] %vm1347_vm5, %v2240_v55 }
 0x561   : > { %v2275_v33 = vld [vmem:[#allocation5 + $0x10] sm:$0xff] }
 0x565   : > { %v2276_v44 = vld [vmem:[#allocation5 + $0x18] sm:$0xff] }
 0x5ac   : > { %v2290_v8 = vpop.permute.xlu1 %2289 }
 0x5ad   : > { %v2280_v35 = vpop.permute.xlu0 %2279  ;;  %v2299_v39 = vmul.f32 %v2290_v8, %v2275_v33 }
 0x5ae   : > { %v2297_v43 = vmul.f32 %v2280_v35, %v2273_v34 }
 0x5b0   : > { %v2295_v46 = vpop.permute.xlu1 %2294  ;;  %v2301_v50 = vcombine.low %v2297_v43, %v2299_v39  ;;  %v2302_v51 = vcombine.high %v2297_v43, %v2299_v39 }
 0x5b1   : > { %v2300_v14 = vmul.f32 %v2295_v46, %v2276_v44  ;;  %v2285_v11 = vpop.permute.xlu0 %2284 }
 0x5b2   : > { %v2298_v32 = vmul.f32 %v2285_v11, %v2274_v45  ;;  %v2309_v54 = vrot.slane %v2301_v50, %v2308_v49  ;;  %v2316_v55 = vrot.slane %v2302_v51, %v2308_v49 }
 0x5b4   : > { %v2317_v38 = vcombine.low %v2298_v32, %v2300_v14  ;;  %v2318_v42 = vcombine.high %v2298_v32, %v2300_v14 }
 0x5b6   : > { %v2325_v57 = vrot.slane %v2317_v38, %v2308_v49  ;;  %v2332_v58 = vrot.slane %v2318_v42, %v2308_v49 }
 0x5b8   : > { %v2333_v59 = vcombine.low %v2309_v54, %v2325_v57  ;;  %v2334_v48 = vcombine.high %v2309_v54, %v2325_v57  ;;  %v2349_v61 = vcombine.low %v2316_v55, %v2332_v58  ;;  %v2350_v62 = vcombine.high %v2316_v55, %v2332_v58 }
 0x5ba   : > { %v2341_v0 = vrot.slane %v2333_v59, %v2340_v52  ;;  %v2348_v1 = vrot.slane %v2334_v48, %v2340_v52  ;;  %v2357_v2 = vrot.slane %v2349_v61, %v2340_v52  ;;  %v2364_v4 = vrot.slane %v2350_v62, %v2340_v52 }
 0x5bc   : > { %v2369_v5 = vcombine.low %v2341_v0, %v2348_v1  ;;  %v2809_v10 = vcombine.high %v2341_v0, %v2348_v1  ;;  %v2385_v12 = vcombine.low %v2357_v2, %v2364_v4  ;;  %v2810_v13 = vcombine.high %v2357_v2, %v2364_v4 }
 0x5be   : > { %v2376_v15 = vrot.slane %v2369_v5, %v2308_v49  ;;  %v2384_v16 = vrot.slane %v2809_v10, %v2308_v49  ;;  %v2392_v17 = vrot.slane %v2385_v12, %v2308_v49  ;;  %v2400_v18 = vrot.slane %v2810_v13, %v2308_v49 }
 0x5c0   : > { %v2402_v20 = vcombine.high %v2376_v15, %v2384_v16  ;;  %v2418_v21 = vcombine.high %v2392_v17, %v2400_v18  ;;  %v2401_v22 = vcombine.low %v2376_v15, %v2384_v16  ;;  %v2417_v23 = vcombine.low %v2392_v17, %v2400_v18 }
 0x5c2   : > { %v2416_v9 = vrot.slane %v2402_v20, %v2340_v52  ;;  %v2432_v24 = vrot.slane %v2418_v21, %v2340_v52  ;;  %v2409_v60 = vrot.slane %v2401_v22, %v2340_v52  ;;  %v2425_v25 = vrot.slane %v2417_v23, %v2340_v52 }
 0x5c4   : > { %v2435_v53 = vcombine.low %v2416_v9, %v2432_v24  ;;  %v2434_v63 = vcombine.high %v2409_v60, %v2425_v25  ;;  %v2433_v56 = vcombine.low %v2409_v60, %v2425_v25  ;;  %v2436_v26 = vcombine.high %v2416_v9, %v2432_v24 }
 0x5c6   : > { %2442 = vrot.lane.b32.xlu1 %v2435_v53, %s3856_s10  ;;  %2438 = vrot.lane.b32.xlu0 %v2434_v63, %s3857_s20 }
 0x5ca   : > { %2446 = vrot.lane.b32.xlu0 %v2436_v26, %s3858_s23 }
 0x638   : > { %v2439_v27 = vpop.permute.xlu0 %2438  ;;  %v2443_v28 = vpop.permute.xlu1 %2442 }
 0x639   : > { %v2449_v29 = vsel %vm1347_vm5, %v2433_v56, %v2439_v27 }
 0x63a   : > { %v2451_v30 = vsel %vm2450_vm13, %v2449_v29, %v2443_v28 }
 0x63c   : > { %v2447_v3 = vpop.permute.xlu0 %2446 }
 0x63d   : > { %v2453_v6 = vsel %vm2452_vm14, %v2451_v30, %v2447_v3 }
 0x63e   : > { %3296 = vmatmul.mubr.msk.f32.vlgmr.msra.gmra.mrb[0].mxu0 %vm2469_vm10, %v2453_v6 }
 0x711   : > { %v2563_v31 = vpop.f32.mrb[0].mxu0 }
 0x712   : > { %v2564_v33 = vadd.f32 %v2811_v7, %v2563_v31  ;;  %v3297_v34 = vpop.f32.mrb[1].mxu0 }
 0x714   : > { %2567 = vst.msk [vmem:[%s922_s7] sm:$0xff] %vm2469_vm10, %v2564_v33 }
 0x715 PF: > { %s2822_s22 = sshll.u32 %s3819_s8, 1  ;;  %s2584_s18 = sshll.u32 %s922_s7, 4  ;;  %s4761_s18 = int_to_ptr.vmem [resolvable:$true] %s2584_s18 }
 0x716   : > { %s2580_s17 = sadd.s32 %s3815_s30, %s2822_s22  ;;  %s4862_s2 = sld [smem:[#allocation20_spill]] }
 0x717   : > { %s2823_s14 = sshll.u32 %s2580_s17, 7  ;;  %s4863_s27 = sand.u32 1, %s3795_s25  }
 0x718   : > { %s2569_s10 = scalar_lea.sflag [#allocation9], %s4863_s27  ;;  %s3709_s20 = scalar_lea.vmem %s4761_s18, 128 }
 0x719   : > { %p3710_p8 = scmp.ne.s32.totalorder %s4761_s18, %s3709_s20  ;;  %s3859_s30 = smov [#allocation8]  }
 0x71a   : > { %s3713_s8 = sshll.u32 %s3859_s30, 4  ;;  %s3714_s8 = int_to_ptr.vmem [resolvable:$false] %s3713_s8 }
 0x71b   : > { %p3711_p10 = pnand %p3710_p8, %p3986_p9  ;;  %s3715_s1 = scalar_lea.vmem %s3714_s8, 256 }
 0x71c   : > { %s2582_s29 = scalar_lea.hbm %s4862_s2, %s2823_s14  ;;  %p3716_p13 = scmp.lt.s32.totalorder %s4761_s18, %s3714_s8 }
 0x71d   : > { %p3712_p12 = pneg %p3711_p10  ;;  %p3717_p0 = scmp.lt.s32.totalorder %s3715_s1, %s3709_s20 }
 0x71f   : > { %p3718_p1 = por %p3717_p0, %p3716_p13 }
 0x721   : > { %p3719_p2 = pnand %p3718_p1, %p3712_p12 }
 0x723   : > { %3722 = shalt.err (!%p3719_p2)
}
 0x724   : > { %s3723_s7 = scalar_lea.hbm %s2582_s29, 128  ;;  %s3727_s11 = scalar_lea.hbm %s4862_s2, 512 }
 0x725   : > { %p3724_p3 = scmp.ne.s32.totalorder %s2582_s29, %s3723_s7  ;;  %p3728_p6 = scmp.lt.u32.totalorder %s2582_s29, %s4862_s2 }
 0x726   : > { %p3729_p7 = scmp.lt.u32.totalorder %s3727_s11, %s3723_s7  ;;  %p3731_p10 = scmp.lt.u32.totalorder %s3723_s7, %s2582_s29 }
 0x727   : > { %p3725_p4 = pnand %p3724_p3, %p3986_p9 }
 0x728   : > { %p3730_p8 = por %p3729_p7, %p3728_p6 }
 0x729   : > { %p3726_p5 = pneg %p3725_p4 }
 0x72a   : > { %p3732_p13 = por %p3731_p10, %p3730_p8 }
 0x72c   : > { %p3733_p12 = pnand %p3732_p13, %p3726_p5 }
 0x72e   : > { %3736 = shalt.err (!%p3733_p12)
}
 0x72f   : > { %3556 = dma.vmem_to_hbm [thread:$0]  (%p3986_p9), %s4761_s18, 128, %s2582_s29, %s2569_s10  }
 0x730 PF: > { %s4864_s14 = sld [smem:[#allocation11_spill]]  ;;  %p3562_p0 = scmp.ge.s32.totalorder %s3835_s12, 2 }
 0x732   : > { %p3559_p1 = pnand %p3562_p0, %p3993_p11 }
 0x736   : > { %s2596_s15 = sand.u32 1, %s4864_s14  }
 0x737   : > { %s2597_s27 = scalar_lea.sflag [#allocation9], %s2596_s15 }
 0x738   : > { %3786 = dma.done.wait (!%p3559_p1), %s2597_s27, 128  }
 0x739   : > { %3788 = vsyncadd (!%p3559_p1), %s2597_s27, 4294967168  ;;  %s20_s12 = sadd.s32 1, %s3835_s12   ;;  %s4866_s20 = smov %s4004_s24 }
 0x73a   : > { %p17_p2 = scmp.ge.s32.totalorder %s20_s12, 14   ;;  %s4867_s30 = sld [smem:[#allocation12_spill]] }
 0x73b   : > { %s4868_s8 = sld [smem:[#allocation13_spill]]  ;;  %s4869_s21 = sld [smem:[#allocation14_spill]] }
 0x73c   : > { %s4870_s10 = sld [smem:[#allocation15_spill]]  ;;  %s4871_s11 = sld [smem:[#allocation16_spill]] }
 0x73d   : > { %s4872_s24 = smov %s3795_s25  ;;  %s4873_s25 = smov %s3799_s26 }
 0x73e   : > { %s4874_s26 = smov %s4866_s20  ;;  %s4875_s27 = smov %s3807_s28 }
 0x73f   : > { %s4876_s28 = smov %s4001_s13  ;;  %s4877_s29 = smov %s3823_s9 }
 0x740   :  { %19 = sbr.rel (!%p17_p2) target bundleno = 11 (0xb), region = 183 }
 0x741   : > { %s4878_s9 = smov %s4869_s21 }
 0x747   :  { %2602 = vsyncpa [#allocation9], 1 }
 0x748   :  { %2604 = vsyncpa [#allocation9 + $0x1], 1 }

</bundles_post_ra>
